<compile_context>
chip_gen: v7x
topology: tpu7x:2x2x1
jax: 0.10.0
libtpu: 0.0.40
codegen_flags: <defaults>
</compile_context>

<pallas_src>
import functools

import jax
import jax.numpy as jnp
from jax import lax
from jax.experimental import pallas as pl
from jax.experimental.pallas import tpu as pltpu

NGF = 8      # base generator width
N_RES = 2    # residual blocks
EPS = 1e-5   # InstanceNorm2d default eps


# ----------------------------------------------------------------------------
# Fused per-layer Pallas kernel: GEMM^T + bias + InstanceNorm + act (+skip/tanh)
# ----------------------------------------------------------------------------
def _fused_layer_kernel(*refs, act, use_in, has_skip):
    if has_skip:
        p_ref, w_ref, b_ref, g_ref, be_ref, s_ref, o_ref = refs
    else:
        p_ref, w_ref, b_ref, g_ref, be_ref, o_ref = refs
        s_ref = None

    # (Cout, K) @ (K, HW) -> (Cout, HW); lane axis = HW (lane-dense for the
    # large layers), f32 accumulation on the MXU from bf16 operands.
    y = jnp.dot(w_ref[...], p_ref[0], preferred_element_type=jnp.float32)
    y = y + b_ref[...]                                   # (Cout, 1) lane-broadcast

    if use_in:
        # InstanceNorm over the spatial (lane) axis, per channel, f32 stats.
        mean = jnp.mean(y, axis=1, keepdims=True)
        var = jnp.mean(jnp.square(y - mean), axis=1, keepdims=True)
        y = (y - mean) * lax.rsqrt(var + EPS)
        y = y * g_ref[...] + be_ref[...]

    if act == "relu":
        y = jnp.maximum(y, 0.0)
    if s_ref is not None:                                # residual-add epilogue
        y = y + s_ref[0]
    if act == "tanh":                                    # final-layer epilogue
        y = jnp.tanh(y)

    o_ref[0] = y


# ----------------------------------------------------------------------------
# Plain-JAX glue: transposed im2col (bf16), layer wrapper, parameter init
# ----------------------------------------------------------------------------
def _extract_patches_t(x, kh, kw, stride, pad, pad_mode):
    """x: (B, C, H, W) f32 -> transposed im2col (B, kh*kw*C, Ho*Wo) bf16."""
    if pad > 0:
        x = jnp.pad(x, ((0, 0), (0, 0), (pad, pad), (pad, pad)), mode=pad_mode)
    B, C, Hp, Wp = x.shape
    Ho = (Hp - kh) // stride + 1
    Wo = (Wp - kw) // stride + 1
    slabs = []
    for di in range(kh):
        for dj in range(kw):
            s = x[:, :, di:di + stride * Ho:stride, dj:dj + stride * Wo:stride]
            slabs.append(s.reshape(B, C, Ho * Wo))
    patches = jnp.concatenate(slabs, axis=1)             # K index = (di*kw+dj)*C + ci
    return patches.astype(jnp.bfloat16), Ho, Wo


def fused_conv_layer(x, p, k, stride, pad, pad_mode, act, use_in=True, skip=None):
    """x: (B, Cin, H, W) f32 -> (B, Cout, Ho, Wo) f32, one pallas_call."""
    patches, Ho, Wo = _extract_patches_t(x, k, k, stride, pad, pad_mode)
    B, K, HW = patches.shape
    Cout = p["w"].shape[0]
    has_skip = skip is not None

    in_specs = [
        pl.BlockSpec((1, K, HW), lambda b: (b, 0, 0)),   # patches^T (per sample)
        pl.BlockSpec((Cout, K), lambda b: (0, 0)),       # w^T (bf16)
        pl.BlockSpec((Cout, 1), lambda b: (0, 0)),       # bias
        pl.BlockSpec((Cout, 1), lambda b: (0, 0)),       # gamma
        pl.BlockSpec((Cout, 1), lambda b: (0, 0)),       # beta
    ]
    args = [patches, p["w"], p["b"], p["gamma"], p["beta"]]
    if has_skip:
        in_specs.append(pl.BlockSpec((1, Cout, HW), lambda b: (b, 0, 0)))
        args.append(skip.reshape(B, Cout, HW))

    kernel = functools.partial(_fused_layer_kernel, act=act, use_in=use_in,
                               has_skip=has_skip)
    out = pl.pallas_call(
        kernel,
        out_shape=jax.ShapeDtypeStruct((B, Cout, HW), jnp.float32),
        grid=(B,),
        in_specs=in_specs,
        out_specs=pl.BlockSpec((1, Cout, HW), lambda b: (b, 0, 0)),
        compiler_params=pltpu.CompilerParams(dimension_semantics=("parallel",)),
    )(*args)
    return out.reshape(B, Cout, Ho, Wo)


def init_conv(key, kh, kw, cin, cout):
    k1, k2 = jax.random.split(key)
    fan_in = kh * kw * cin
    w = jax.random.normal(k1, (kh, kw, cin, cout), jnp.float32) / jnp.sqrt(fan_in)
    b = jax.random.normal(k2, (cout,), jnp.float32) * 0.01
    # (Cout, K) with K index = (di*kw + dj)*cin + ci — matches _extract_patches_t.
    w_t = w.reshape(kh * kw * cin, cout).T
    return {
        "w": w_t.astype(jnp.bfloat16),
        "b": b.reshape(cout, 1),
        "gamma": jnp.ones((cout, 1), jnp.float32),   # InstanceNorm affine params
        "beta": jnp.zeros((cout, 1), jnp.float32),
    }


def init_params(key):
    layers = [
        ("c7s1_in", 7, 3, NGF),
        ("down1", 3, NGF, NGF * 2),
        ("down2", 3, NGF * 2, NGF * 4),
    ]
    for r in range(N_RES):
        layers.append((f"res{r}_a", 3, NGF * 4, NGF * 4))
        layers.append((f"res{r}_b", 3, NGF * 4, NGF * 4))
    layers += [
        ("up1", 3, NGF * 4, NGF * 2),
        ("up2", 3, NGF * 2, NGF),
        ("c7s1_out", 7, NGF, 3),
    ]
    params = {}
    for idx, (name, k, cin, cout) in enumerate(layers):
        params[name] = init_conv(jax.random.fold_in(key, idx), k, k, cin, cout)
    return params


# ----------------------------------------------------------------------------
# ResNet generator (networks.get_resnet equivalent): returns list of feature
# maps; R_recon.forward keeps only [-1].
# ----------------------------------------------------------------------------
def resnet_generator(params, x_nchw):
    feats = []
    y = fused_conv_layer(x_nchw, params["c7s1_in"], 7, 1, 3, "reflect", "relu")
    feats.append(y)
    y = fused_conv_layer(y, params["down1"], 3, 2, 1, "constant", "relu")
    feats.append(y)
    y = fused_conv_layer(y, params["down2"], 3, 2, 1, "constant", "relu")
    feats.append(y)
    for r in range(N_RES):
        h = fused_conv_layer(y, params[f"res{r}_a"], 3, 1, 1, "reflect", "relu")
        # residual add fused into the second conv's epilogue
        y = fused_conv_layer(h, params[f"res{r}_b"], 3, 1, 1, "reflect", "none",
                             skip=y)
        feats.append(y)
    # TODO(synk): original get_resnet may use ConvTranspose2d for upsampling;
    # nearest-upsample + conv is used here as the synthetic equivalent.
    y = jnp.repeat(jnp.repeat(y, 2, axis=2), 2, axis=3)
    y = fused_conv_layer(y, params["up1"], 3, 1, 1, "constant", "relu")
    feats.append(y)
    y = jnp.repeat(jnp.repeat(y, 2, axis=2), 2, axis=3)
    y = fused_conv_layer(y, params["up2"], 3, 1, 1, "constant", "relu")
    feats.append(y)
    # final 7x7 conv + tanh fused, no InstanceNorm
    y = fused_conv_layer(y, params["c7s1_out"], 7, 1, 3, "reflect", "tanh",
                         use_in=False)
    feats.append(y)
    return feats


def r_recon_forward(params, syn_img, real_img, clear_img):
    """Eval-mode R_recon.forward: R_recon_img = resnet(real_img)[-1].

    TODO(synk): the train=True branch (MUNIT S/R encoders+decoders loaded from
    a checkpoint, discriminator, losses/optimizers) has no in-script equivalent.
    """
    del syn_img, clear_img  # only consumed by the (untranslatable) train branch
    return resnet_generator(params, real_img)[-1]        # already NCHW


if __name__ == "__main__":
    key = jax.random.PRNGKey(0)
    pkey, dkey = jax.random.split(key)
    params = init_params(pkey)

    B, C, H, W = 2, 3, 16, 16
    k1, k2, k3 = jax.random.split(dkey, 3)
    syn_img = jax.random.uniform(k1, (B, C, H, W), jnp.float32, -1.0, 1.0)
    real_img = jax.random.uniform(k2, (B, C, H, W), jnp.float32, -1.0, 1.0)
    clear_img = jax.random.uniform(k3, (B, C, H, W), jnp.float32, -1.0, 1.0)

    out = jax.jit(r_recon_forward)(params, syn_img, real_img, clear_img)
    out = jax.block_until_ready(out)
    assert out.shape == (B, C, H, W)
    assert bool(jnp.all(jnp.isfinite(out)))
    print("KERNEL_OK")
</pallas_src>

<mosaic_0001>
module attributes {stable_mosaic.version = 11 : i64} {
  func.func @_fused_layer_kernel(%arg0: i32, %arg1: memref<1x147x256xbf16, #tpu.memory_space<vmem>>, %arg2: memref<8x147xbf16, #tpu.memory_space<vmem>>, %arg3: memref<8x1xf32, #tpu.memory_space<vmem>>, %arg4: memref<8x1xf32, #tpu.memory_space<vmem>>, %arg5: memref<8x1xf32, #tpu.memory_space<vmem>>, %arg6: memref<1x8x256xf32, #tpu.memory_space<vmem>>) attributes {dimension_semantics = [#tpu.dimension_semantics<parallel>], iteration_bounds = array<i64: 2>, scalar_prefetch = 0 : i64, scratch_operands = 0 : i64, tpu.core_type = #tpu.core_type<tc>, window_params = [{transform_indices = @transform_0, window_bounds = array<i64: 1, 147, 256>}, {pipeline_mode = #tpu.pipeline_mode<synchronous>, transform_indices = @transform_1, window_bounds = array<i64: 8, 147>}, {pipeline_mode = #tpu.pipeline_mode<synchronous>, transform_indices = @transform_2, window_bounds = array<i64: 8, 1>}, {pipeline_mode = #tpu.pipeline_mode<synchronous>, transform_indices = @transform_3, window_bounds = array<i64: 8, 1>}, {pipeline_mode = #tpu.pipeline_mode<synchronous>, transform_indices = @transform_4, window_bounds = array<i64: 8, 1>}, {transform_indices = @transform_5, window_bounds = array<i64: 1, 8, 256>}]} {
    %c0 = arith.constant 0 : index
    %c0_0 = arith.constant 0 : index
    %0 = vector.load %arg2[%c0, %c0_0] : memref<8x147xbf16, #tpu.memory_space<vmem>>, vector<8x147xbf16>
    %c0_1 = arith.constant 0 : index
    %c0_2 = arith.constant 0 : index
    %c0_3 = arith.constant 0 : index
    %1 = vector.load %arg1[%c0_1, %c0_2, %c0_3] : memref<1x147x256xbf16, #tpu.memory_space<vmem>>, vector<1x147x256xbf16>
    %2 = vector.shape_cast %1 : vector<1x147x256xbf16> to vector<147x256xbf16>
    %cst = arith.constant dense<0.000000e+00> : vector<8x256xf32>
    %3 = tpu.matmul %0, %2, %cst {dimension_numbers = #tpu.dot_dimension_numbers<[1], [0], [0], [1], [0, 0, 1, 1], [], []>} : vector<8x147xbf16>, vector<147x256xbf16>, vector<8x256xf32> -> vector<8x256xf32>
    %c0_4 = arith.constant 0 : index
    %c0_5 = arith.constant 0 : index
    %4 = vector.load %arg3[%c0_4, %c0_5] : memref<8x1xf32, #tpu.memory_space<vmem>>, vector<8x1xf32>
    %5 = vector.broadcast %4 : vector<8x1xf32> to vector<8x256xf32>
    %6 = arith.addf %3, %5 : vector<8x256xf32>
    %cst_6 = arith.constant dense<0.000000e+00> : vector<8xf32>
    %7 = vector.multi_reduction <add>, %6, %cst_6 [1] : vector<8x256xf32> to vector<8xf32>
    %8 = vector.shape_cast %7 : vector<8xf32> to vector<8x1xf32>
    %cst_7 = arith.constant 2.560000e+02 : f32
    %9 = vector.broadcast %cst_7 : f32 to vector<8x1xf32>
    %10 = arith.divf %8, %9 : vector<8x1xf32>
    %11 = vector.broadcast %10 : vector<8x1xf32> to vector<8x256xf32>
    %12 = arith.subf %6, %11 : vector<8x256xf32>
    %13 = arith.mulf %12, %12 : vector<8x256xf32>
    %cst_8 = arith.constant dense<0.000000e+00> : vector<8xf32>
    %14 = vector.multi_reduction <add>, %13, %cst_8 [1] : vector<8x256xf32> to vector<8xf32>
    %15 = vector.shape_cast %14 : vector<8xf32> to vector<8x1xf32>
    %cst_9 = arith.constant 2.560000e+02 : f32
    %16 = vector.broadcast %cst_9 : f32 to vector<8x1xf32>
    %17 = arith.divf %15, %16 : vector<8x1xf32>
    %18 = vector.broadcast %10 : vector<8x1xf32> to vector<8x256xf32>
    %19 = arith.subf %6, %18 : vector<8x256xf32>
    %cst_10 = arith.constant 9.99999974E-6 : f32
    %20 = vector.broadcast %cst_10 : f32 to vector<8x1xf32>
    %21 = arith.addf %17, %20 : vector<8x1xf32>
    %22 = math.rsqrt %21 : vector<8x1xf32>
    %23 = vector.broadcast %22 : vector<8x1xf32> to vector<8x256xf32>
    %24 = arith.mulf %19, %23 : vector<8x256xf32>
    %c0_11 = arith.constant 0 : index
    %c0_12 = arith.constant 0 : index
    %25 = vector.load %arg4[%c0_11, %c0_12] : memref<8x1xf32, #tpu.memory_space<vmem>>, vector<8x1xf32>
    %26 = vector.broadcast %25 : vector<8x1xf32> to vector<8x256xf32>
    %27 = arith.mulf %24, %26 : vector<8x256xf32>
    %c0_13 = arith.constant 0 : index
    %c0_14 = arith.constant 0 : index
    %28 = vector.load %arg5[%c0_13, %c0_14] : memref<8x1xf32, #tpu.memory_space<vmem>>, vector<8x1xf32>
    %29 = vector.broadcast %28 : vector<8x1xf32> to vector<8x256xf32>
    %30 = arith.addf %27, %29 : vector<8x256xf32>
    %cst_15 = arith.constant 0.000000e+00 : f32
    %31 = vector.broadcast %cst_15 : f32 to vector<8x256xf32>
    %32 = arith.maximumf %30, %31 : vector<8x256xf32>
    %c0_16 = arith.constant 0 : index
    %c0_17 = arith.constant 0 : index
    %c0_18 = arith.constant 0 : index
    %33 = vector.load %arg6[%c0_16, %c0_17, %c0_18] : memref<1x8x256xf32, #tpu.memory_space<vmem>>, vector<1x8x256xf32>
    %34 = vector.shape_cast %33 : vector<1x8x256xf32> to vector<8x256xf32>
    %35 = vector.shape_cast %32 : vector<8x256xf32> to vector<1x8x256xf32>
    tpu.vector_store %arg6[%c0_16, %c0_17, %c0_18], %35 {strides = array<i32>} : memref<1x8x256xf32, #tpu.memory_space<vmem>>, vector<1x8x256xf32>,
    return
  }
  func.func @transform_0(%arg0: i32) -> (i32, i32, i32) {
    %c0_i32 = arith.constant 0 : i32
    %c0_i32_0 = arith.constant 0 : i32
    %c0_i32_1 = arith.constant 0 : i32
    return %arg0, %c0_i32, %c0_i32_0 : i32, i32, i32
  }
  func.func @transform_1(%arg0: i32) -> (i32, i32) {
    %c0_i32 = arith.constant 0 : i32
    %c0_i32_0 = arith.constant 0 : i32
    %c0_i32_1 = arith.constant 0 : i32
    return %c0_i32, %c0_i32_0 : i32, i32
  }
  func.func @transform_2(%arg0: i32) -> (i32, i32) {
    %c0_i32 = arith.constant 0 : i32
    %c0_i32_0 = arith.constant 0 : i32
    %c0_i32_1 = arith.constant 0 : i32
    return %c0_i32, %c0_i32_0 : i32, i32
  }
  func.func @transform_3(%arg0: i32) -> (i32, i32) {
    %c0_i32 = arith.constant 0 : i32
    %c0_i32_0 = arith.constant 0 : i32
    %c0_i32_1 = arith.constant 0 : i32
    return %c0_i32, %c0_i32_0 : i32, i32
  }
  func.func @transform_4(%arg0: i32) -> (i32, i32) {
    %c0_i32 = arith.constant 0 : i32
    %c0_i32_0 = arith.constant 0 : i32
    %c0_i32_1 = arith.constant 0 : i32
    return %c0_i32, %c0_i32_0 : i32, i32
  }
  func.func @transform_5(%arg0: i32) -> (i32, i32, i32) {
    %c0_i32 = arith.constant 0 : i32
    %c0_i32_0 = arith.constant 0 : i32
    %c0_i32_1 = arith.constant 0 : i32
    return %arg0, %c0_i32, %c0_i32_0 : i32, i32, i32
  }
}

module attributes {stable_mosaic.version = 11 : i64} {
  func.func @_fused_layer_kernel(%arg0: i32, %arg1: memref<1x72x64xbf16, #tpu.memory_space<vmem>>, %arg2: memref<16x72xbf16, #tpu.memory_space<vmem>>, %arg3: memref<16x1xf32, #tpu.memory_space<vmem>>, %arg4: memref<16x1xf32, #tpu.memory_space<vmem>>, %arg5: memref<16x1xf32, #tpu.memory_space<vmem>>, %arg6: memref<1x16x64xf32, #tpu.memory_space<vmem>>) attributes {dimension_semantics = [#tpu.dimension_semantics<parallel>], iteration_bounds = array<i64: 2>, scalar_prefetch = 0 : i64, scratch_operands = 0 : i64, tpu.core_type = #tpu.core_type<tc>, window_params = [{transform_indices = @transform_0, window_bounds = array<i64: 1, 72, 64>}, {pipeline_mode = #tpu.pipeline_mode<synchronous>, transform_indices = @transform_1, window_bounds = array<i64: 16, 72>}, {pipeline_mode = #tpu.pipeline_mode<synchronous>, transform_indices = @transform_2, window_bounds = array<i64: 16, 1>}, {pipeline_mode = #tpu.pipeline_mode<synchronous>, transform_indices = @transform_3, window_bounds = array<i64: 16, 1>}, {pipeline_mode = #tpu.pipeline_mode<synchronous>, transform_indices = @transform_4, window_bounds = array<i64: 16, 1>}, {transform_indices = @transform_5, window_bounds = array<i64: 1, 16, 64>}]} {
    %c0 = arith.constant 0 : index
    %c0_0 = arith.constant 0 : index
    %0 = vector.load %arg2[%c0, %c0_0] : memref<16x72xbf16, #tpu.memory_space<vmem>>, vector<16x72xbf16>
    %c0_1 = arith.constant 0 : index
    %c0_2 = arith.constant 0 : index
    %c0_3 = arith.constant 0 : index
    %1 = vector.load %arg1[%c0_1, %c0_2, %c0_3] : memref<1x72x64xbf16, #tpu.memory_space<vmem>>, vector<1x72x64xbf16>
    %2 = vector.shape_cast %1 : vector<1x72x64xbf16> to vector<72x64xbf16>
    %cst = arith.constant dense<0.000000e+00> : vector<16x64xf32>
    %3 = tpu.matmul %0, %2, %cst {dimension_numbers = #tpu.dot_dimension_numbers<[1], [0], [0], [1], [0, 0, 1, 1], [], []>} : vector<16x72xbf16>, vector<72x64xbf16>, vector<16x64xf32> -> vector<16x64xf32>
    %c0_4 = arith.constant 0 : index
    %c0_5 = arith.constant 0 : index
    %4 = vector.load %arg3[%c0_4, %c0_5] : memref<16x1xf32, #tpu.memory_space<vmem>>, vector<16x1xf32>
    %5 = vector.broadcast %4 : vector<16x1xf32> to vector<16x64xf32>
    %6 = arith.addf %3, %5 : vector<16x64xf32>
    %cst_6 = arith.constant dense<0.000000e+00> : vector<16xf32>
    %7 = vector.multi_reduction <add>, %6, %cst_6 [1] : vector<16x64xf32> to vector<16xf32>
    %8 = vector.shape_cast %7 : vector<16xf32> to vector<16x1xf32>
    %cst_7 = arith.constant 6.400000e+01 : f32
    %9 = vector.broadcast %cst_7 : f32 to vector<16x1xf32>
    %10 = arith.divf %8, %9 : vector<16x1xf32>
    %11 = vector.broadcast %10 : vector<16x1xf32> to vector<16x64xf32>
    %12 = arith.subf %6, %11 : vector<16x64xf32>
    %13 = arith.mulf %12, %12 : vector<16x64xf32>
    %cst_8 = arith.constant dense<0.000000e+00> : vector<16xf32>
    %14 = vector.multi_reduction <add>, %13, %cst_8 [1] : vector<16x64xf32> to vector<16xf32>
    %15 = vector.shape_cast %14 : vector<16xf32> to vector<16x1xf32>
    %cst_9 = arith.constant 6.400000e+01 : f32
    %16 = vector.broadcast %cst_9 : f32 to vector<16x1xf32>
    %17 = arith.divf %15, %16 : vector<16x1xf32>
    %18 = vector.broadcast %10 : vector<16x1xf32> to vector<16x64xf32>
    %19 = arith.subf %6, %18 : vector<16x64xf32>
    %cst_10 = arith.constant 9.99999974E-6 : f32
    %20 = vector.broadcast %cst_10 : f32 to vector<16x1xf32>
    %21 = arith.addf %17, %20 : vector<16x1xf32>
    %22 = math.rsqrt %21 : vector<16x1xf32>
    %23 = vector.broadcast %22 : vector<16x1xf32> to vector<16x64xf32>
    %24 = arith.mulf %19, %23 : vector<16x64xf32>
    %c0_11 = arith.constant 0 : index
    %c0_12 = arith.constant 0 : index
    %25 = vector.load %arg4[%c0_11, %c0_12] : memref<16x1xf32, #tpu.memory_space<vmem>>, vector<16x1xf32>
    %26 = vector.broadcast %25 : vector<16x1xf32> to vector<16x64xf32>
    %27 = arith.mulf %24, %26 : vector<16x64xf32>
    %c0_13 = arith.constant 0 : index
    %c0_14 = arith.constant 0 : index
    %28 = vector.load %arg5[%c0_13, %c0_14] : memref<16x1xf32, #tpu.memory_space<vmem>>, vector<16x1xf32>
    %29 = vector.broadcast %28 : vector<16x1xf32> to vector<16x64xf32>
    %30 = arith.addf %27, %29 : vector<16x64xf32>
    %cst_15 = arith.constant 0.000000e+00 : f32
    %31 = vector.broadcast %cst_15 : f32 to vector<16x64xf32>
    %32 = arith.maximumf %30, %31 : vector<16x64xf32>
    %c0_16 = arith.constant 0 : index
    %c0_17 = arith.constant 0 : index
    %c0_18 = arith.constant 0 : index
    %33 = vector.load %arg6[%c0_16, %c0_17, %c0_18] : memref<1x16x64xf32, #tpu.memory_space<vmem>>, vector<1x16x64xf32>
    %34 = vector.shape_cast %33 : vector<1x16x64xf32> to vector<16x64xf32>
    %35 = vector.shape_cast %32 : vector<16x64xf32> to vector<1x16x64xf32>
    tpu.vector_store %arg6[%c0_16, %c0_17, %c0_18], %35 {strides = array<i32>} : memref<1x16x64xf32, #tpu.memory_space<vmem>>, vector<1x16x64xf32>,
    return
  }
  func.func @transform_0(%arg0: i32) -> (i32, i32, i32) {
    %c0_i32 = arith.constant 0 : i32
    %c0_i32_0 = arith.constant 0 : i32
    %c0_i32_1 = arith.constant 0 : i32
    return %arg0, %c0_i32, %c0_i32_0 : i32, i32, i32
  }
  func.func @transform_1(%arg0: i32) -> (i32, i32) {
    %c0_i32 = arith.constant 0 : i32
    %c0_i32_0 = arith.constant 0 : i32
    %c0_i32_1 = arith.constant 0 : i32
    return %c0_i32, %c0_i32_0 : i32, i32
  }
  func.func @transform_2(%arg0: i32) -> (i32, i32) {
    %c0_i32 = arith.constant 0 : i32
    %c0_i32_0 = arith.constant 0 : i32
    %c0_i32_1 = arith.constant 0 : i32
    return %c0_i32, %c0_i32_0 : i32, i32
  }
  func.func @transform_3(%arg0: i32) -> (i32, i32) {
    %c0_i32 = arith.constant 0 : i32
    %c0_i32_0 = arith.constant 0 : i32
    %c0_i32_1 = arith.constant 0 : i32
    return %c0_i32, %c0_i32_0 : i32, i32
  }
  func.func @transform_4(%arg0: i32) -> (i32, i32) {
    %c0_i32 = arith.constant 0 : i32
    %c0_i32_0 = arith.constant 0 : i32
    %c0_i32_1 = arith.constant 0 : i32
    return %c0_i32, %c0_i32_0 : i32, i32
  }
  func.func @transform_5(%arg0: i32) -> (i32, i32, i32) {
    %c0_i32 = arith.constant 0 : i32
    %c0_i32_0 = arith.constant 0 : i32
    %c0_i32_1 = arith.constant 0 : i32
    return %arg0, %c0_i32, %c0_i32_0 : i32, i32, i32
  }
}

module attributes {stable_mosaic.version = 11 : i64} {
  func.func @_fused_layer_kernel(%arg0: i32, %arg1: memref<1x144x16xbf16, #tpu.memory_space<vmem>>, %arg2: memref<32x144xbf16, #tpu.memory_space<vmem>>, %arg3: memref<32x1xf32, #tpu.memory_space<vmem>>, %arg4: memref<32x1xf32, #tpu.memory_space<vmem>>, %arg5: memref<32x1xf32, #tpu.memory_space<vmem>>, %arg6: memref<1x32x16xf32, #tpu.memory_space<vmem>>) attributes {dimension_semantics = [#tpu.dimension_semantics<parallel>], iteration_bounds = array<i64: 2>, scalar_prefetch = 0 : i64, scratch_operands = 0 : i64, tpu.core_type = #tpu.core_type<tc>, window_params = [{transform_indices = @transform_0, window_bounds = array<i64: 1, 144, 16>}, {pipeline_mode = #tpu.pipeline_mode<synchronous>, transform_indices = @transform_1, window_bounds = array<i64: 32, 144>}, {pipeline_mode = #tpu.pipeline_mode<synchronous>, transform_indices = @transform_2, window_bounds = array<i64: 32, 1>}, {pipeline_mode = #tpu.pipeline_mode<synchronous>, transform_indices = @transform_3, window_bounds = array<i64: 32, 1>}, {pipeline_mode = #tpu.pipeline_mode<synchronous>, transform_indices = @transform_4, window_bounds = array<i64: 32, 1>}, {transform_indices = @transform_5, window_bounds = array<i64: 1, 32, 16>}]} {
    %c0 = arith.constant 0 : index
    %c0_0 = arith.constant 0 : index
    %0 = vector.load %arg2[%c0, %c0_0] : memref<32x144xbf16, #tpu.memory_space<vmem>>, vector<32x144xbf16>
    %c0_1 = arith.constant 0 : index
    %c0_2 = arith.constant 0 : index
    %c0_3 = arith.constant 0 : index
    %1 = vector.load %arg1[%c0_1, %c0_2, %c0_3] : memref<1x144x16xbf16, #tpu.memory_space<vmem>>, vector<1x144x16xbf16>
    %2 = vector.shape_cast %1 : vector<1x144x16xbf16> to vector<144x16xbf16>
    %cst = arith.constant dense<0.000000e+00> : vector<32x16xf32>
    %3 = tpu.matmul %0, %2, %cst {dimension_numbers = #tpu.dot_dimension_numbers<[1], [0], [0], [1], [0, 0, 1, 1], [], []>} : vector<32x144xbf16>, vector<144x16xbf16>, vector<32x16xf32> -> vector<32x16xf32>
    %c0_4 = arith.constant 0 : index
    %c0_5 = arith.constant 0 : index
    %4 = vector.load %arg3[%c0_4, %c0_5] : memref<32x1xf32, #tpu.memory_space<vmem>>, vector<32x1xf32>
    %5 = vector.broadcast %4 : vector<32x1xf32> to vector<32x16xf32>
    %6 = arith.addf %3, %5 : vector<32x16xf32>
    %cst_6 = arith.constant dense<0.000000e+00> : vector<32xf32>
    %7 = vector.multi_reduction <add>, %6, %cst_6 [1] : vector<32x16xf32> to vector<32xf32>
    %8 = vector.shape_cast %7 : vector<32xf32> to vector<32x1xf32>
    %cst_7 = arith.constant 1.600000e+01 : f32
    %9 = vector.broadcast %cst_7 : f32 to vector<32x1xf32>
    %10 = arith.divf %8, %9 : vector<32x1xf32>
    %11 = vector.broadcast %10 : vector<32x1xf32> to vector<32x16xf32>
    %12 = arith.subf %6, %11 : vector<32x16xf32>
    %13 = arith.mulf %12, %12 : vector<32x16xf32>
    %cst_8 = arith.constant dense<0.000000e+00> : vector<32xf32>
    %14 = vector.multi_reduction <add>, %13, %cst_8 [1] : vector<32x16xf32> to vector<32xf32>
    %15 = vector.shape_cast %14 : vector<32xf32> to vector<32x1xf32>
    %cst_9 = arith.constant 1.600000e+01 : f32
    %16 = vector.broadcast %cst_9 : f32 to vector<32x1xf32>
    %17 = arith.divf %15, %16 : vector<32x1xf32>
    %18 = vector.broadcast %10 : vector<32x1xf32> to vector<32x16xf32>
    %19 = arith.subf %6, %18 : vector<32x16xf32>
    %cst_10 = arith.constant 9.99999974E-6 : f32
    %20 = vector.broadcast %cst_10 : f32 to vector<32x1xf32>
    %21 = arith.addf %17, %20 : vector<32x1xf32>
    %22 = math.rsqrt %21 : vector<32x1xf32>
    %23 = vector.broadcast %22 : vector<32x1xf32> to vector<32x16xf32>
    %24 = arith.mulf %19, %23 : vector<32x16xf32>
    %c0_11 = arith.constant 0 : index
    %c0_12 = arith.constant 0 : index
    %25 = vector.load %arg4[%c0_11, %c0_12] : memref<32x1xf32, #tpu.memory_space<vmem>>, vector<32x1xf32>
    %26 = vector.broadcast %25 : vector<32x1xf32> to vector<32x16xf32>
    %27 = arith.mulf %24, %26 : vector<32x16xf32>
    %c0_13 = arith.constant 0 : index
    %c0_14 = arith.constant 0 : index
    %28 = vector.load %arg5[%c0_13, %c0_14] : memref<32x1xf32, #tpu.memory_space<vmem>>, vector<32x1xf32>
    %29 = vector.broadcast %28 : vector<32x1xf32> to vector<32x16xf32>
    %30 = arith.addf %27, %29 : vector<32x16xf32>
    %cst_15 = arith.constant 0.000000e+00 : f32
    %31 = vector.broadcast %cst_15 : f32 to vector<32x16xf32>
    %32 = arith.maximumf %30, %31 : vector<32x16xf32>
    %c0_16 = arith.constant 0 : index
    %c0_17 = arith.constant 0 : index
    %c0_18 = arith.constant 0 : index
    %33 = vector.load %arg6[%c0_16, %c0_17, %c0_18] : memref<1x32x16xf32, #tpu.memory_space<vmem>>, vector<1x32x16xf32>
    %34 = vector.shape_cast %33 : vector<1x32x16xf32> to vector<32x16xf32>
    %35 = vector.shape_cast %32 : vector<32x16xf32> to vector<1x32x16xf32>
    tpu.vector_store %arg6[%c0_16, %c0_17, %c0_18], %35 {strides = array<i32>} : memref<1x32x16xf32, #tpu.memory_space<vmem>>, vector<1x32x16xf32>,
    return
  }
  func.func @transform_0(%arg0: i32) -> (i32, i32, i32) {
    %c0_i32 = arith.constant 0 : i32
    %c0_i32_0 = arith.constant 0 : i32
    %c0_i32_1 = arith.constant 0 : i32
    return %arg0, %c0_i32, %c0_i32_0 : i32, i32, i32
  }
  func.func @transform_1(%arg0: i32) -> (i32, i32) {
    %c0_i32 = arith.constant 0 : i32
    %c0_i32_0 = arith.constant 0 : i32
    %c0_i32_1 = arith.constant 0 : i32
    return %c0_i32, %c0_i32_0 : i32, i32
  }
  func.func @transform_2(%arg0: i32) -> (i32, i32) {
    %c0_i32 = arith.constant 0 : i32
    %c0_i32_0 = arith.constant 0 : i32
    %c0_i32_1 = arith.constant 0 : i32
    return %c0_i32, %c0_i32_0 : i32, i32
  }
  func.func @transform_3(%arg0: i32) -> (i32, i32) {
    %c0_i32 = arith.constant 0 : i32
    %c0_i32_0 = arith.constant 0 : i32
    %c0_i32_1 = arith.constant 0 : i32
    return %c0_i32, %c0_i32_0 : i32, i32
  }
  func.func @transform_4(%arg0: i32) -> (i32, i32) {
    %c0_i32 = arith.constant 0 : i32
    %c0_i32_0 = arith.constant 0 : i32
    %c0_i32_1 = arith.constant 0 : i32
    return %c0_i32, %c0_i32_0 : i32, i32
  }
  func.func @transform_5(%arg0: i32) -> (i32, i32, i32) {
    %c0_i32 = arith.constant 0 : i32
    %c0_i32_0 = arith.constant 0 : i32
    %c0_i32_1 = arith.constant 0 : i32
    return %arg0, %c0_i32, %c0_i32_0 : i32, i32, i32
  }
}

module attributes {stable_mosaic.version = 11 : i64} {
  func.func @_fused_layer_kernel(%arg0: i32, %arg1: memref<1x288x16xbf16, #tpu.memory_space<vmem>>, %arg2: memref<32x288xbf16, #tpu.memory_space<vmem>>, %arg3: memref<32x1xf32, #tpu.memory_space<vmem>>, %arg4: memref<32x1xf32, #tpu.memory_space<vmem>>, %arg5: memref<32x1xf32, #tpu.memory_space<vmem>>, %arg6: memref<1x32x16xf32, #tpu.memory_space<vmem>>) attributes {dimension_semantics = [#tpu.dimension_semantics<parallel>], iteration_bounds = array<i64: 2>, scalar_prefetch = 0 : i64, scratch_operands = 0 : i64, tpu.core_type = #tpu.core_type<tc>, window_params = [{transform_indices = @transform_0, window_bounds = array<i64: 1, 288, 16>}, {pipeline_mode = #tpu.pipeline_mode<synchronous>, transform_indices = @transform_1, window_bounds = array<i64: 32, 288>}, {pipeline_mode = #tpu.pipeline_mode<synchronous>, transform_indices = @transform_2, window_bounds = array<i64: 32, 1>}, {pipeline_mode = #tpu.pipeline_mode<synchronous>, transform_indices = @transform_3, window_bounds = array<i64: 32, 1>}, {pipeline_mode = #tpu.pipeline_mode<synchronous>, transform_indices = @transform_4, window_bounds = array<i64: 32, 1>}, {transform_indices = @transform_5, window_bounds = array<i64: 1, 32, 16>}]} {
    %c0 = arith.constant 0 : index
    %c0_0 = arith.constant 0 : index
    %0 = vector.load %arg2[%c0, %c0_0] : memref<32x288xbf16, #tpu.memory_space<vmem>>, vector<32x288xbf16>
    %c0_1 = arith.constant 0 : index
    %c0_2 = arith.constant 0 : index
    %c0_3 = arith.constant 0 : index
    %1 = vector.load %arg1[%c0_1, %c0_2, %c0_3] : memref<1x288x16xbf16, #tpu.memory_space<vmem>>, vector<1x288x16xbf16>
    %2 = vector.shape_cast %1 : vector<1x288x16xbf16> to vector<288x16xbf16>
    %cst = arith.constant dense<0.000000e+00> : vector<32x16xf32>
    %3 = tpu.matmul %0, %2, %cst {dimension_numbers = #tpu.dot_dimension_numbers<[1], [0], [0], [1], [0, 0, 1, 1], [], []>} : vector<32x288xbf16>, vector<288x16xbf16>, vector<32x16xf32> -> vector<32x16xf32>
    %c0_4 = arith.constant 0 : index
    %c0_5 = arith.constant 0 : index
    %4 = vector.load %arg3[%c0_4, %c0_5] : memref<32x1xf32, #tpu.memory_space<vmem>>, vector<32x1xf32>
    %5 = vector.broadcast %4 : vector<32x1xf32> to vector<32x16xf32>
    %6 = arith.addf %3, %5 : vector<32x16xf32>
    %cst_6 = arith.constant dense<0.000000e+00> : vector<32xf32>
    %7 = vector.multi_reduction <add>, %6, %cst_6 [1] : vector<32x16xf32> to vector<32xf32>
    %8 = vector.shape_cast %7 : vector<32xf32> to vector<32x1xf32>
    %cst_7 = arith.constant 1.600000e+01 : f32
    %9 = vector.broadcast %cst_7 : f32 to vector<32x1xf32>
    %10 = arith.divf %8, %9 : vector<32x1xf32>
    %11 = vector.broadcast %10 : vector<32x1xf32> to vector<32x16xf32>
    %12 = arith.subf %6, %11 : vector<32x16xf32>
    %13 = arith.mulf %12, %12 : vector<32x16xf32>
    %cst_8 = arith.constant dense<0.000000e+00> : vector<32xf32>
    %14 = vector.multi_reduction <add>, %13, %cst_8 [1] : vector<32x16xf32> to vector<32xf32>
    %15 = vector.shape_cast %14 : vector<32xf32> to vector<32x1xf32>
    %cst_9 = arith.constant 1.600000e+01 : f32
    %16 = vector.broadcast %cst_9 : f32 to vector<32x1xf32>
    %17 = arith.divf %15, %16 : vector<32x1xf32>
    %18 = vector.broadcast %10 : vector<32x1xf32> to vector<32x16xf32>
    %19 = arith.subf %6, %18 : vector<32x16xf32>
    %cst_10 = arith.constant 9.99999974E-6 : f32
    %20 = vector.broadcast %cst_10 : f32 to vector<32x1xf32>
    %21 = arith.addf %17, %20 : vector<32x1xf32>
    %22 = math.rsqrt %21 : vector<32x1xf32>
    %23 = vector.broadcast %22 : vector<32x1xf32> to vector<32x16xf32>
    %24 = arith.mulf %19, %23 : vector<32x16xf32>
    %c0_11 = arith.constant 0 : index
    %c0_12 = arith.constant 0 : index
    %25 = vector.load %arg4[%c0_11, %c0_12] : memref<32x1xf32, #tpu.memory_space<vmem>>, vector<32x1xf32>
    %26 = vector.broadcast %25 : vector<32x1xf32> to vector<32x16xf32>
    %27 = arith.mulf %24, %26 : vector<32x16xf32>
    %c0_13 = arith.constant 0 : index
    %c0_14 = arith.constant 0 : index
    %28 = vector.load %arg5[%c0_13, %c0_14] : memref<32x1xf32, #tpu.memory_space<vmem>>, vector<32x1xf32>
    %29 = vector.broadcast %28 : vector<32x1xf32> to vector<32x16xf32>
    %30 = arith.addf %27, %29 : vector<32x16xf32>
    %cst_15 = arith.constant 0.000000e+00 : f32
    %31 = vector.broadcast %cst_15 : f32 to vector<32x16xf32>
    %32 = arith.maximumf %30, %31 : vector<32x16xf32>
    %c0_16 = arith.constant 0 : index
    %c0_17 = arith.constant 0 : index
    %c0_18 = arith.constant 0 : index
    %33 = vector.load %arg6[%c0_16, %c0_17, %c0_18] : memref<1x32x16xf32, #tpu.memory_space<vmem>>, vector<1x32x16xf32>
    %34 = vector.shape_cast %33 : vector<1x32x16xf32> to vector<32x16xf32>
    %35 = vector.shape_cast %32 : vector<32x16xf32> to vector<1x32x16xf32>
    tpu.vector_store %arg6[%c0_16, %c0_17, %c0_18], %35 {strides = array<i32>} : memref<1x32x16xf32, #tpu.memory_space<vmem>>, vector<1x32x16xf32>,
    return
  }
  func.func @transform_0(%arg0: i32) -> (i32, i32, i32) {
    %c0_i32 = arith.constant 0 : i32
    %c0_i32_0 = arith.constant 0 : i32
    %c0_i32_1 = arith.constant 0 : i32
    return %arg0, %c0_i32, %c0_i32_0 : i32, i32, i32
  }
  func.func @transform_1(%arg0: i32) -> (i32, i32) {
    %c0_i32 = arith.constant 0 : i32
    %c0_i32_0 = arith.constant 0 : i32
    %c0_i32_1 = arith.constant 0 : i32
    return %c0_i32, %c0_i32_0 : i32, i32
  }
  func.func @transform_2(%arg0: i32) -> (i32, i32) {
    %c0_i32 = arith.constant 0 : i32
    %c0_i32_0 = arith.constant 0 : i32
    %c0_i32_1 = arith.constant 0 : i32
    return %c0_i32, %c0_i32_0 : i32, i32
  }
  func.func @transform_3(%arg0: i32) -> (i32, i32) {
    %c0_i32 = arith.constant 0 : i32
    %c0_i32_0 = arith.constant 0 : i32
    %c0_i32_1 = arith.constant 0 : i32
    return %c0_i32, %c0_i32_0 : i32, i32
  }
  func.func @transform_4(%arg0: i32) -> (i32, i32) {
    %c0_i32 = arith.constant 0 : i32
    %c0_i32_0 = arith.constant 0 : i32
    %c0_i32_1 = arith.constant 0 : i32
    return %c0_i32, %c0_i32_0 : i32, i32
  }
  func.func @transform_5(%arg0: i32) -> (i32, i32, i32) {
    %c0_i32 = arith.constant 0 : i32
    %c0_i32_0 = arith.constant 0 : i32
    %c0_i32_1 = arith.constant 0 : i32
    return %arg0, %c0_i32, %c0_i32_0 : i32, i32, i32
  }
}

module attributes {stable_mosaic.version = 11 : i64} {
  func.func @_fused_layer_kernel(%arg0: i32, %arg1: memref<1x288x16xbf16, #tpu.memory_space<vmem>>, %arg2: memref<32x288xbf16, #tpu.memory_space<vmem>>, %arg3: memref<32x1xf32, #tpu.memory_space<vmem>>, %arg4: memref<32x1xf32, #tpu.memory_space<vmem>>, %arg5: memref<32x1xf32, #tpu.memory_space<vmem>>, %arg6: memref<1x32x16xf32, #tpu.memory_space<vmem>>, %arg7: memref<1x32x16xf32, #tpu.memory_space<vmem>>) attributes {dimension_semantics = [#tpu.dimension_semantics<parallel>], iteration_bounds = array<i64: 2>, scalar_prefetch = 0 : i64, scratch_operands = 0 : i64, tpu.core_type = #tpu.core_type<tc>, window_params = [{transform_indices = @transform_0, window_bounds = array<i64: 1, 288, 16>}, {pipeline_mode = #tpu.pipeline_mode<synchronous>, transform_indices = @transform_1, window_bounds = array<i64: 32, 288>}, {pipeline_mode = #tpu.pipeline_mode<synchronous>, transform_indices = @transform_2, window_bounds = array<i64: 32, 1>}, {pipeline_mode = #tpu.pipeline_mode<synchronous>, transform_indices = @transform_3, window_bounds = array<i64: 32, 1>}, {pipeline_mode = #tpu.pipeline_mode<synchronous>, transform_indices = @transform_4, window_bounds = array<i64: 32, 1>}, {transform_indices = @transform_5, window_bounds = array<i64: 1, 32, 16>}, {transform_indices = @transform_6, window_bounds = array<i64: 1, 32, 16>}]} {
    %c0 = arith.constant 0 : index
    %c0_0 = arith.constant 0 : index
    %0 = vector.load %arg2[%c0, %c0_0] : memref<32x288xbf16, #tpu.memory_space<vmem>>, vector<32x288xbf16>
    %c0_1 = arith.constant 0 : index
    %c0_2 = arith.constant 0 : index
    %c0_3 = arith.constant 0 : index
    %1 = vector.load %arg1[%c0_1, %c0_2, %c0_3] : memref<1x288x16xbf16, #tpu.memory_space<vmem>>, vector<1x288x16xbf16>
    %2 = vector.shape_cast %1 : vector<1x288x16xbf16> to vector<288x16xbf16>
    %cst = arith.constant dense<0.000000e+00> : vector<32x16xf32>
    %3 = tpu.matmul %0, %2, %cst {dimension_numbers = #tpu.dot_dimension_numbers<[1], [0], [0], [1], [0, 0, 1, 1], [], []>} : vector<32x288xbf16>, vector<288x16xbf16>, vector<32x16xf32> -> vector<32x16xf32>
    %c0_4 = arith.constant 0 : index
    %c0_5 = arith.constant 0 : index
    %4 = vector.load %arg3[%c0_4, %c0_5] : memref<32x1xf32, #tpu.memory_space<vmem>>, vector<32x1xf32>
    %5 = vector.broadcast %4 : vector<32x1xf32> to vector<32x16xf32>
    %6 = arith.addf %3, %5 : vector<32x16xf32>
    %cst_6 = arith.constant dense<0.000000e+00> : vector<32xf32>
    %7 = vector.multi_reduction <add>, %6, %cst_6 [1] : vector<32x16xf32> to vector<32xf32>
    %8 = vector.shape_cast %7 : vector<32xf32> to vector<32x1xf32>
    %cst_7 = arith.constant 1.600000e+01 : f32
    %9 = vector.broadcast %cst_7 : f32 to vector<32x1xf32>
    %10 = arith.divf %8, %9 : vector<32x1xf32>
    %11 = vector.broadcast %10 : vector<32x1xf32> to vector<32x16xf32>
    %12 = arith.subf %6, %11 : vector<32x16xf32>
    %13 = arith.mulf %12, %12 : vector<32x16xf32>
    %cst_8 = arith.constant dense<0.000000e+00> : vector<32xf32>
    %14 = vector.multi_reduction <add>, %13, %cst_8 [1] : vector<32x16xf32> to vector<32xf32>
    %15 = vector.shape_cast %14 : vector<32xf32> to vector<32x1xf32>
    %cst_9 = arith.constant 1.600000e+01 : f32
    %16 = vector.broadcast %cst_9 : f32 to vector<32x1xf32>
    %17 = arith.divf %15, %16 : vector<32x1xf32>
    %18 = vector.broadcast %10 : vector<32x1xf32> to vector<32x16xf32>
    %19 = arith.subf %6, %18 : vector<32x16xf32>
    %cst_10 = arith.constant 9.99999974E-6 : f32
    %20 = vector.broadcast %cst_10 : f32 to vector<32x1xf32>
    %21 = arith.addf %17, %20 : vector<32x1xf32>
    %22 = math.rsqrt %21 : vector<32x1xf32>
    %23 = vector.broadcast %22 : vector<32x1xf32> to vector<32x16xf32>
    %24 = arith.mulf %19, %23 : vector<32x16xf32>
    %c0_11 = arith.constant 0 : index
    %c0_12 = arith.constant 0 : index
    %25 = vector.load %arg4[%c0_11, %c0_12] : memref<32x1xf32, #tpu.memory_space<vmem>>, vector<32x1xf32>
    %26 = vector.broadcast %25 : vector<32x1xf32> to vector<32x16xf32>
    %27 = arith.mulf %24, %26 : vector<32x16xf32>
    %c0_13 = arith.constant 0 : index
    %c0_14 = arith.constant 0 : index
    %28 = vector.load %arg5[%c0_13, %c0_14] : memref<32x1xf32, #tpu.memory_space<vmem>>, vector<32x1xf32>
    %29 = vector.broadcast %28 : vector<32x1xf32> to vector<32x16xf32>
    %30 = arith.addf %27, %29 : vector<32x16xf32>
    %c0_15 = arith.constant 0 : index
    %c0_16 = arith.constant 0 : index
    %c0_17 = arith.constant 0 : index
    %31 = vector.load %arg6[%c0_15, %c0_16, %c0_17] : memref<1x32x16xf32, #tpu.memory_space<vmem>>, vector<1x32x16xf32>
    %32 = vector.shape_cast %31 : vector<1x32x16xf32> to vector<32x16xf32>
    %33 = arith.addf %30, %32 : vector<32x16xf32>
    %c0_18 = arith.constant 0 : index
    %c0_19 = arith.constant 0 : index
    %c0_20 = arith.constant 0 : index
    %34 = vector.load %arg7[%c0_18, %c0_19, %c0_20] : memref<1x32x16xf32, #tpu.memory_space<vmem>>, vector<1x32x16xf32>
    %35 = vector.shape_cast %34 : vector<1x32x16xf32> to vector<32x16xf32>
    %36 = vector.shape_cast %33 : vector<32x16xf32> to vector<1x32x16xf32>
    tpu.vector_store %arg7[%c0_18, %c0_19, %c0_20], %36 {strides = array<i32>} : memref<1x32x16xf32, #tpu.memory_space<vmem>>, vector<1x32x16xf32>,
    return
  }
  func.func @transform_0(%arg0: i32) -> (i32, i32, i32) {
    %c0_i32 = arith.constant 0 : i32
    %c0_i32_0 = arith.constant 0 : i32
    %c0_i32_1 = arith.constant 0 : i32
    return %arg0, %c0_i32, %c0_i32_0 : i32, i32, i32
  }
  func.func @transform_1(%arg0: i32) -> (i32, i32) {
    %c0_i32 = arith.constant 0 : i32
    %c0_i32_0 = arith.constant 0 : i32
    %c0_i32_1 = arith.constant 0 : i32
    return %c0_i32, %c0_i32_0 : i32, i32
  }
  func.func @transform_2(%arg0: i32) -> (i32, i32) {
    %c0_i32 = arith.constant 0 : i32
    %c0_i32_0 = arith.constant 0 : i32
    %c0_i32_1 = arith.constant 0 : i32
    return %c0_i32, %c0_i32_0 : i32, i32
  }
  func.func @transform_3(%arg0: i32) -> (i32, i32) {
    %c0_i32 = arith.constant 0 : i32
    %c0_i32_0 = arith.constant 0 : i32
    %c0_i32_1 = arith.constant 0 : i32
    return %c0_i32, %c0_i32_0 : i32, i32
  }
  func.func @transform_4(%arg0: i32) -> (i32, i32) {
    %c0_i32 = arith.constant 0 : i32
    %c0_i32_0 = arith.constant 0 : i32
    %c0_i32_1 = arith.constant 0 : i32
    return %c0_i32, %c0_i32_0 : i32, i32
  }
  func.func @transform_5(%arg0: i32) -> (i32, i32, i32) {
    %c0_i32 = arith.constant 0 : i32
    %c0_i32_0 = arith.constant 0 : i32
    %c0_i32_1 = arith.constant 0 : i32
    return %arg0, %c0_i32, %c0_i32_0 : i32, i32, i32
  }
  func.func @transform_6(%arg0: i32) -> (i32, i32, i32) {
    %c0_i32 = arith.constant 0 : i32
    %c0_i32_0 = arith.constant 0 : i32
    %c0_i32_1 = arith.constant 0 : i32
    return %arg0, %c0_i32, %c0_i32_0 : i32, i32, i32
  }
}

module attributes {stable_mosaic.version = 11 : i64} {
  func.func @_fused_layer_kernel(%arg0: i32, %arg1: memref<1x288x64xbf16, #tpu.memory_space<vmem>>, %arg2: memref<16x288xbf16, #tpu.memory_space<vmem>>, %arg3: memref<16x1xf32, #tpu.memory_space<vmem>>, %arg4: memref<16x1xf32, #tpu.memory_space<vmem>>, %arg5: memref<16x1xf32, #tpu.memory_space<vmem>>, %arg6: memref<1x16x64xf32, #tpu.memory_space<vmem>>) attributes {dimension_semantics = [#tpu.dimension_semantics<parallel>], iteration_bounds = array<i64: 2>, scalar_prefetch = 0 : i64, scratch_operands = 0 : i64, tpu.core_type = #tpu.core_type<tc>, window_params = [{transform_indices = @transform_0, window_bounds = array<i64: 1, 288, 64>}, {pipeline_mode = #tpu.pipeline_mode<synchronous>, transform_indices = @transform_1, window_bounds = array<i64: 16, 288>}, {pipeline_mode = #tpu.pipeline_mode<synchronous>, transform_indices = @transform_2, window_bounds = array<i64: 16, 1>}, {pipeline_mode = #tpu.pipeline_mode<synchronous>, transform_indices = @transform_3, window_bounds = array<i64: 16, 1>}, {pipeline_mode = #tpu.pipeline_mode<synchronous>, transform_indices = @transform_4, window_bounds = array<i64: 16, 1>}, {transform_indices = @transform_5, window_bounds = array<i64: 1, 16, 64>}]} {
    %c0 = arith.constant 0 : index
    %c0_0 = arith.constant 0 : index
    %0 = vector.load %arg2[%c0, %c0_0] : memref<16x288xbf16, #tpu.memory_space<vmem>>, vector<16x288xbf16>
    %c0_1 = arith.constant 0 : index
    %c0_2 = arith.constant 0 : index
    %c0_3 = arith.constant 0 : index
    %1 = vector.load %arg1[%c0_1, %c0_2, %c0_3] : memref<1x288x64xbf16, #tpu.memory_space<vmem>>, vector<1x288x64xbf16>
    %2 = vector.shape_cast %1 : vector<1x288x64xbf16> to vector<288x64xbf16>
    %cst = arith.constant dense<0.000000e+00> : vector<16x64xf32>
    %3 = tpu.matmul %0, %2, %cst {dimension_numbers = #tpu.dot_dimension_numbers<[1], [0], [0], [1], [0, 0, 1, 1], [], []>} : vector<16x288xbf16>, vector<288x64xbf16>, vector<16x64xf32> -> vector<16x64xf32>
    %c0_4 = arith.constant 0 : index
    %c0_5 = arith.constant 0 : index
    %4 = vector.load %arg3[%c0_4, %c0_5] : memref<16x1xf32, #tpu.memory_space<vmem>>, vector<16x1xf32>
    %5 = vector.broadcast %4 : vector<16x1xf32> to vector<16x64xf32>
    %6 = arith.addf %3, %5 : vector<16x64xf32>
    %cst_6 = arith.constant dense<0.000000e+00> : vector<16xf32>
    %7 = vector.multi_reduction <add>, %6, %cst_6 [1] : vector<16x64xf32> to vector<16xf32>
    %8 = vector.shape_cast %7 : vector<16xf32> to vector<16x1xf32>
    %cst_7 = arith.constant 6.400000e+01 : f32
    %9 = vector.broadcast %cst_7 : f32 to vector<16x1xf32>
    %10 = arith.divf %8, %9 : vector<16x1xf32>
    %11 = vector.broadcast %10 : vector<16x1xf32> to vector<16x64xf32>
    %12 = arith.subf %6, %11 : vector<16x64xf32>
    %13 = arith.mulf %12, %12 : vector<16x64xf32>
    %cst_8 = arith.constant dense<0.000000e+00> : vector<16xf32>
    %14 = vector.multi_reduction <add>, %13, %cst_8 [1] : vector<16x64xf32> to vector<16xf32>
    %15 = vector.shape_cast %14 : vector<16xf32> to vector<16x1xf32>
    %cst_9 = arith.constant 6.400000e+01 : f32
    %16 = vector.broadcast %cst_9 : f32 to vector<16x1xf32>
    %17 = arith.divf %15, %16 : vector<16x1xf32>
    %18 = vector.broadcast %10 : vector<16x1xf32> to vector<16x64xf32>
    %19 = arith.subf %6, %18 : vector<16x64xf32>
    %cst_10 = arith.constant 9.99999974E-6 : f32
    %20 = vector.broadcast %cst_10 : f32 to vector<16x1xf32>
    %21 = arith.addf %17, %20 : vector<16x1xf32>
    %22 = math.rsqrt %21 : vector<16x1xf32>
    %23 = vector.broadcast %22 : vector<16x1xf32> to vector<16x64xf32>
    %24 = arith.mulf %19, %23 : vector<16x64xf32>
    %c0_11 = arith.constant 0 : index
    %c0_12 = arith.constant 0 : index
    %25 = vector.load %arg4[%c0_11, %c0_12] : memref<16x1xf32, #tpu.memory_space<vmem>>, vector<16x1xf32>
    %26 = vector.broadcast %25 : vector<16x1xf32> to vector<16x64xf32>
    %27 = arith.mulf %24, %26 : vector<16x64xf32>
    %c0_13 = arith.constant 0 : index
    %c0_14 = arith.constant 0 : index
    %28 = vector.load %arg5[%c0_13, %c0_14] : memref<16x1xf32, #tpu.memory_space<vmem>>, vector<16x1xf32>
    %29 = vector.broadcast %28 : vector<16x1xf32> to vector<16x64xf32>
    %30 = arith.addf %27, %29 : vector<16x64xf32>
    %cst_15 = arith.constant 0.000000e+00 : f32
    %31 = vector.broadcast %cst_15 : f32 to vector<16x64xf32>
    %32 = arith.maximumf %30, %31 : vector<16x64xf32>
    %c0_16 = arith.constant 0 : index
    %c0_17 = arith.constant 0 : index
    %c0_18 = arith.constant 0 : index
    %33 = vector.load %arg6[%c0_16, %c0_17, %c0_18] : memref<1x16x64xf32, #tpu.memory_space<vmem>>, vector<1x16x64xf32>
    %34 = vector.shape_cast %33 : vector<1x16x64xf32> to vector<16x64xf32>
    %35 = vector.shape_cast %32 : vector<16x64xf32> to vector<1x16x64xf32>
    tpu.vector_store %arg6[%c0_16, %c0_17, %c0_18], %35 {strides = array<i32>} : memref<1x16x64xf32, #tpu.memory_space<vmem>>, vector<1x16x64xf32>,
    return
  }
  func.func @transform_0(%arg0: i32) -> (i32, i32, i32) {
    %c0_i32 = arith.constant 0 : i32
    %c0_i32_0 = arith.constant 0 : i32
    %c0_i32_1 = arith.constant 0 : i32
    return %arg0, %c0_i32, %c0_i32_0 : i32, i32, i32
  }
  func.func @transform_1(%arg0: i32) -> (i32, i32) {
    %c0_i32 = arith.constant 0 : i32
    %c0_i32_0 = arith.constant 0 : i32
    %c0_i32_1 = arith.constant 0 : i32
    return %c0_i32, %c0_i32_0 : i32, i32
  }
  func.func @transform_2(%arg0: i32) -> (i32, i32) {
    %c0_i32 = arith.constant 0 : i32
    %c0_i32_0 = arith.constant 0 : i32
    %c0_i32_1 = arith.constant 0 : i32
    return %c0_i32, %c0_i32_0 : i32, i32
  }
  func.func @transform_3(%arg0: i32) -> (i32, i32) {
    %c0_i32 = arith.constant 0 : i32
    %c0_i32_0 = arith.constant 0 : i32
    %c0_i32_1 = arith.constant 0 : i32
    return %c0_i32, %c0_i32_0 : i32, i32
  }
  func.func @transform_4(%arg0: i32) -> (i32, i32) {
    %c0_i32 = arith.constant 0 : i32
    %c0_i32_0 = arith.constant 0 : i32
    %c0_i32_1 = arith.constant 0 : i32
    return %c0_i32, %c0_i32_0 : i32, i32
  }
  func.func @transform_5(%arg0: i32) -> (i32, i32, i32) {
    %c0_i32 = arith.constant 0 : i32
    %c0_i32_0 = arith.constant 0 : i32
    %c0_i32_1 = arith.constant 0 : i32
    return %arg0, %c0_i32, %c0_i32_0 : i32, i32, i32
  }
}

module attributes {stable_mosaic.version = 11 : i64} {
  func.func @_fused_layer_kernel(%arg0: i32, %arg1: memref<1x144x256xbf16, #tpu.memory_space<vmem>>, %arg2: memref<8x144xbf16, #tpu.memory_space<vmem>>, %arg3: memref<8x1xf32, #tpu.memory_space<vmem>>, %arg4: memref<8x1xf32, #tpu.memory_space<vmem>>, %arg5: memref<8x1xf32, #tpu.memory_space<vmem>>, %arg6: memref<1x8x256xf32, #tpu.memory_space<vmem>>) attributes {dimension_semantics = [#tpu.dimension_semantics<parallel>], iteration_bounds = array<i64: 2>, scalar_prefetch = 0 : i64, scratch_operands = 0 : i64, tpu.core_type = #tpu.core_type<tc>, window_params = [{transform_indices = @transform_0, window_bounds = array<i64: 1, 144, 256>}, {pipeline_mode = #tpu.pipeline_mode<synchronous>, transform_indices = @transform_1, window_bounds = array<i64: 8, 144>}, {pipeline_mode = #tpu.pipeline_mode<synchronous>, transform_indices = @transform_2, window_bounds = array<i64: 8, 1>}, {pipeline_mode = #tpu.pipeline_mode<synchronous>, transform_indices = @transform_3, window_bounds = array<i64: 8, 1>}, {pipeline_mode = #tpu.pipeline_mode<synchronous>, transform_indices = @transform_4, window_bounds = array<i64: 8, 1>}, {transform_indices = @transform_5, window_bounds = array<i64: 1, 8, 256>}]} {
    %c0 = arith.constant 0 : index
    %c0_0 = arith.constant 0 : index
    %0 = vector.load %arg2[%c0, %c0_0] : memref<8x144xbf16, #tpu.memory_space<vmem>>, vector<8x144xbf16>
    %c0_1 = arith.constant 0 : index
    %c0_2 = arith.constant 0 : index
    %c0_3 = arith.constant 0 : index
    %1 = vector.load %arg1[%c0_1, %c0_2, %c0_3] : memref<1x144x256xbf16, #tpu.memory_space<vmem>>, vector<1x144x256xbf16>
    %2 = vector.shape_cast %1 : vector<1x144x256xbf16> to vector<144x256xbf16>
    %cst = arith.constant dense<0.000000e+00> : vector<8x256xf32>
    %3 = tpu.matmul %0, %2, %cst {dimension_numbers = #tpu.dot_dimension_numbers<[1], [0], [0], [1], [0, 0, 1, 1], [], []>} : vector<8x144xbf16>, vector<144x256xbf16>, vector<8x256xf32> -> vector<8x256xf32>
    %c0_4 = arith.constant 0 : index
    %c0_5 = arith.constant 0 : index
    %4 = vector.load %arg3[%c0_4, %c0_5] : memref<8x1xf32, #tpu.memory_space<vmem>>, vector<8x1xf32>
    %5 = vector.broadcast %4 : vector<8x1xf32> to vector<8x256xf32>
    %6 = arith.addf %3, %5 : vector<8x256xf32>
    %cst_6 = arith.constant dense<0.000000e+00> : vector<8xf32>
    %7 = vector.multi_reduction <add>, %6, %cst_6 [1] : vector<8x256xf32> to vector<8xf32>
    %8 = vector.shape_cast %7 : vector<8xf32> to vector<8x1xf32>
    %cst_7 = arith.constant 2.560000e+02 : f32
    %9 = vector.broadcast %cst_7 : f32 to vector<8x1xf32>
    %10 = arith.divf %8, %9 : vector<8x1xf32>
    %11 = vector.broadcast %10 : vector<8x1xf32> to vector<8x256xf32>
    %12 = arith.subf %6, %11 : vector<8x256xf32>
    %13 = arith.mulf %12, %12 : vector<8x256xf32>
    %cst_8 = arith.constant dense<0.000000e+00> : vector<8xf32>
    %14 = vector.multi_reduction <add>, %13, %cst_8 [1] : vector<8x256xf32> to vector<8xf32>
    %15 = vector.shape_cast %14 : vector<8xf32> to vector<8x1xf32>
    %cst_9 = arith.constant 2.560000e+02 : f32
    %16 = vector.broadcast %cst_9 : f32 to vector<8x1xf32>
    %17 = arith.divf %15, %16 : vector<8x1xf32>
    %18 = vector.broadcast %10 : vector<8x1xf32> to vector<8x256xf32>
    %19 = arith.subf %6, %18 : vector<8x256xf32>
    %cst_10 = arith.constant 9.99999974E-6 : f32
    %20 = vector.broadcast %cst_10 : f32 to vector<8x1xf32>
    %21 = arith.addf %17, %20 : vector<8x1xf32>
    %22 = math.rsqrt %21 : vector<8x1xf32>
    %23 = vector.broadcast %22 : vector<8x1xf32> to vector<8x256xf32>
    %24 = arith.mulf %19, %23 : vector<8x256xf32>
    %c0_11 = arith.constant 0 : index
    %c0_12 = arith.constant 0 : index
    %25 = vector.load %arg4[%c0_11, %c0_12] : memref<8x1xf32, #tpu.memory_space<vmem>>, vector<8x1xf32>
    %26 = vector.broadcast %25 : vector<8x1xf32> to vector<8x256xf32>
    %27 = arith.mulf %24, %26 : vector<8x256xf32>
    %c0_13 = arith.constant 0 : index
    %c0_14 = arith.constant 0 : index
    %28 = vector.load %arg5[%c0_13, %c0_14] : memref<8x1xf32, #tpu.memory_space<vmem>>, vector<8x1xf32>
    %29 = vector.broadcast %28 : vector<8x1xf32> to vector<8x256xf32>
    %30 = arith.addf %27, %29 : vector<8x256xf32>
    %cst_15 = arith.constant 0.000000e+00 : f32
    %31 = vector.broadcast %cst_15 : f32 to vector<8x256xf32>
    %32 = arith.maximumf %30, %31 : vector<8x256xf32>
    %c0_16 = arith.constant 0 : index
    %c0_17 = arith.constant 0 : index
    %c0_18 = arith.constant 0 : index
    %33 = vector.load %arg6[%c0_16, %c0_17, %c0_18] : memref<1x8x256xf32, #tpu.memory_space<vmem>>, vector<1x8x256xf32>
    %34 = vector.shape_cast %33 : vector<1x8x256xf32> to vector<8x256xf32>
    %35 = vector.shape_cast %32 : vector<8x256xf32> to vector<1x8x256xf32>
    tpu.vector_store %arg6[%c0_16, %c0_17, %c0_18], %35 {strides = array<i32>} : memref<1x8x256xf32, #tpu.memory_space<vmem>>, vector<1x8x256xf32>,
    return
  }
  func.func @transform_0(%arg0: i32) -> (i32, i32, i32) {
    %c0_i32 = arith.constant 0 : i32
    %c0_i32_0 = arith.constant 0 : i32
    %c0_i32_1 = arith.constant 0 : i32
    return %arg0, %c0_i32, %c0_i32_0 : i32, i32, i32
  }
  func.func @transform_1(%arg0: i32) -> (i32, i32) {
    %c0_i32 = arith.constant 0 : i32
    %c0_i32_0 = arith.constant 0 : i32
    %c0_i32_1 = arith.constant 0 : i32
    return %c0_i32, %c0_i32_0 : i32, i32
  }
  func.func @transform_2(%arg0: i32) -> (i32, i32) {
    %c0_i32 = arith.constant 0 : i32
    %c0_i32_0 = arith.constant 0 : i32
    %c0_i32_1 = arith.constant 0 : i32
    return %c0_i32, %c0_i32_0 : i32, i32
  }
  func.func @transform_3(%arg0: i32) -> (i32, i32) {
    %c0_i32 = arith.constant 0 : i32
    %c0_i32_0 = arith.constant 0 : i32
    %c0_i32_1 = arith.constant 0 : i32
    return %c0_i32, %c0_i32_0 : i32, i32
  }
  func.func @transform_4(%arg0: i32) -> (i32, i32) {
    %c0_i32 = arith.constant 0 : i32
    %c0_i32_0 = arith.constant 0 : i32
    %c0_i32_1 = arith.constant 0 : i32
    return %c0_i32, %c0_i32_0 : i32, i32
  }
  func.func @transform_5(%arg0: i32) -> (i32, i32, i32) {
    %c0_i32 = arith.constant 0 : i32
    %c0_i32_0 = arith.constant 0 : i32
    %c0_i32_1 = arith.constant 0 : i32
    return %arg0, %c0_i32, %c0_i32_0 : i32, i32, i32
  }
}

module attributes {stable_mosaic.version = 11 : i64} {
  func.func @_fused_layer_kernel(%arg0: i32, %arg1: memref<1x392x256xbf16, #tpu.memory_space<vmem>>, %arg2: memref<3x392xbf16, #tpu.memory_space<vmem>>, %arg3: memref<3x1xf32, #tpu.memory_space<vmem>>, %arg4: memref<3x1xf32, #tpu.memory_space<vmem>>, %arg5: memref<3x1xf32, #tpu.memory_space<vmem>>, %arg6: memref<1x3x256xf32, #tpu.memory_space<vmem>>) attributes {dimension_semantics = [#tpu.dimension_semantics<parallel>], iteration_bounds = array<i64: 2>, scalar_prefetch = 0 : i64, scratch_operands = 0 : i64, tpu.core_type = #tpu.core_type<tc>, window_params = [{transform_indices = @transform_0, window_bounds = array<i64: 1, 392, 256>}, {pipeline_mode = #tpu.pipeline_mode<synchronous>, transform_indices = @transform_1, window_bounds = array<i64: 3, 392>}, {pipeline_mode = #tpu.pipeline_mode<synchronous>, transform_indices = @transform_2, window_bounds = array<i64: 3, 1>}, {pipeline_mode = #tpu.pipeline_mode<synchronous>, transform_indices = @transform_3, window_bounds = array<i64: 3, 1>}, {pipeline_mode = #tpu.pipeline_mode<synchronous>, transform_indices = @transform_4, window_bounds = array<i64: 3, 1>}, {transform_indices = @transform_5, window_bounds = array<i64: 1, 3, 256>}]} {
    %c0 = arith.constant 0 : index
    %c0_0 = arith.constant 0 : index
    %0 = vector.load %arg2[%c0, %c0_0] : memref<3x392xbf16, #tpu.memory_space<vmem>>, vector<3x392xbf16>
    %c0_1 = arith.constant 0 : index
    %c0_2 = arith.constant 0 : index
    %c0_3 = arith.constant 0 : index
    %1 = vector.load %arg1[%c0_1, %c0_2, %c0_3] : memref<1x392x256xbf16, #tpu.memory_space<vmem>>, vector<1x392x256xbf16>
    %2 = vector.shape_cast %1 : vector<1x392x256xbf16> to vector<392x256xbf16>
    %cst = arith.constant dense<0.000000e+00> : vector<3x256xf32>
    %3 = tpu.matmul %0, %2, %cst {dimension_numbers = #tpu.dot_dimension_numbers<[1], [0], [0], [1], [0, 0, 1, 1], [], []>} : vector<3x392xbf16>, vector<392x256xbf16>, vector<3x256xf32> -> vector<3x256xf32>
    %c0_4 = arith.constant 0 : index
    %c0_5 = arith.constant 0 : index
    %4 = vector.load %arg3[%c0_4, %c0_5] : memref<3x1xf32, #tpu.memory_space<vmem>>, vector<3x1xf32>
    %5 = vector.broadcast %4 : vector<3x1xf32> to vector<3x256xf32>
    %6 = arith.addf %3, %5 : vector<3x256xf32>
    %7 = math.tanh %6 : vector<3x256xf32>
    %c0_6 = arith.constant 0 : index
    %c0_7 = arith.constant 0 : index
    %c0_8 = arith.constant 0 : index
    %8 = vector.load %arg6[%c0_6, %c0_7, %c0_8] : memref<1x3x256xf32, #tpu.memory_space<vmem>>, vector<1x3x256xf32>
    %9 = vector.shape_cast %8 : vector<1x3x256xf32> to vector<3x256xf32>
    %10 = vector.shape_cast %7 : vector<3x256xf32> to vector<1x3x256xf32>
    tpu.vector_store %arg6[%c0_6, %c0_7, %c0_8], %10 {strides = array<i32>} : memref<1x3x256xf32, #tpu.memory_space<vmem>>, vector<1x3x256xf32>,
    return
  }
  func.func @transform_0(%arg0: i32) -> (i32, i32, i32) {
    %c0_i32 = arith.constant 0 : i32
    %c0_i32_0 = arith.constant 0 : i32
    %c0_i32_1 = arith.constant 0 : i32
    return %arg0, %c0_i32, %c0_i32_0 : i32, i32, i32
  }
  func.func @transform_1(%arg0: i32) -> (i32, i32) {
    %c0_i32 = arith.constant 0 : i32
    %c0_i32_0 = arith.constant 0 : i32
    %c0_i32_1 = arith.constant 0 : i32
    return %c0_i32, %c0_i32_0 : i32, i32
  }
  func.func @transform_2(%arg0: i32) -> (i32, i32) {
    %c0_i32 = arith.constant 0 : i32
    %c0_i32_0 = arith.constant 0 : i32
    %c0_i32_1 = arith.constant 0 : i32
    return %c0_i32, %c0_i32_0 : i32, i32
  }
  func.func @transform_3(%arg0: i32) -> (i32, i32) {
    %c0_i32 = arith.constant 0 : i32
    %c0_i32_0 = arith.constant 0 : i32
    %c0_i32_1 = arith.constant 0 : i32
    return %c0_i32, %c0_i32_0 : i32, i32
  }
  func.func @transform_4(%arg0: i32) -> (i32, i32) {
    %c0_i32 = arith.constant 0 : i32
    %c0_i32_0 = arith.constant 0 : i32
    %c0_i32_1 = arith.constant 0 : i32
    return %c0_i32, %c0_i32_0 : i32, i32
  }
  func.func @transform_5(%arg0: i32) -> (i32, i32, i32) {
    %c0_i32 = arith.constant 0 : i32
    %c0_i32_0 = arith.constant 0 : i32
    %c0_i32_1 = arith.constant 0 : i32
    return %arg0, %c0_i32, %c0_i32_0 : i32, i32, i32
  }
}

</mosaic_0001>

<bundles_post_ra>
// kernel: r_recon_forward.10
= control target key start
LH: loop header
LB: loop body
LE: loop exit
PB: predicated region body
PF: predicated region fallthrough
CT: control target
= control target key end

     0   :  { %s620_s18 = smov 0   ;;  %s674_s0 = inlined_call_operand.vmem [shape: bf16[2,147,256], index: 0, kind: input, shape index: {}]   ;;  %s675_s1 = inlined_call_operand.vmem [shape: bf16[8,147], index: 1, kind: input, shape index: {}]   ;;  %s676_s2 = inlined_call_operand.vmem [shape: f32[8,1], index: 2, kind: input, shape index: {}]   ;;  %s677_s3 = inlined_call_operand.vmem [shape: f32[8,1], index: 3, kind: input, shape index: {}]   ;;  %s678_s4 = inlined_call_operand.vmem [shape: f32[8,1], index: 4, kind: input, shape index: {}]   ;;  %s679_s5 = inlined_call_operand.vmem [shape: f32[2,8,256], index: 5, kind: output, shape index: {}]  }
   0x1 LB: > { %s500_s19 = sadd.s32 4294967295, %s586_s18   ;;  %p504_p0 = scmp.ge.s32.totalorder %s586_s18, 1  ;;  %s586_s18 = sphi %s620_s18, %s15_s18  }
   0x2   : > { %p187_p1 = scmp.lt.s32.totalorder %s586_s18, 3 }
   0x4   : > { %p188_p2 = pnand %p504_p0, %p187_p1 }
   0x5   : > { %p215_p3 = scmp.lt.s32.totalorder (!%p188_p2), %s500_s19, 1  ;;  %v226_v0 = vld [vmem:[%s675_s1] sm:$0xff] (!%p188_p2)  ;;  %vm353_vm0 = vcmask (!%p188_p2), 154624   ;;  %v588_v3 = vmov (!%p188_p2), 0   ;;  %vm357_vm1 = vcmask (!%p188_p2), 1040384   ;;  %vm358_vm2 = vcmask (!%p188_p2), 1041408  }
   0x6   : > { %191 = sbr.rel (%p188_p2) target bundleno = 591 (0x24f), region = 40  ;;  %v509_v1 = vcombine.high (!%p188_p2), %v226_v0, %v226_v0  ;;  %v246_v2 = vld [vmem:[%s676_s2] sm:$0xff] (!%p188_p2)  ;;  %545 = vset.pattern.permute.xlu0 (!%p188_p2), %v588_v3  ;;  %546 = vset.pattern.permute.xlu1 (!%p188_p2), %v588_v3  ;;  %v589_v20 = vmov (!%p188_p2), 65535   ;;  %v508_v30 = vcombine.low (!%p188_p2), %v226_v0, %v226_v0 }
   0x7   : > { %249 = vperm.xlu0 (!%p188_p2), %545, %v246_v2   ;;  %v359_v21 = vsel (!%p188_p2), %vm357_vm1, 4294967295, %v589_v20  ;;  %v425_v31 = vld [vmem:[%s677_s3] sm:$0xff] (!%p188_p2) }
   0x8   : > { %530 = vmatprep.mubr.msk.bf16.mxu0 (!%p188_p2), %vm353_vm0, %v509_v1  ;;  %v360_v25 = vsel (!%p188_p2), %vm358_vm2, %v359_v21, 0  ;;  %428 = vperm.xlu1 (!%p188_p2), %546, %v425_v31   ;;  %v433_v47 = vld [vmem:[%s678_s4] sm:$0xff] (!%p188_p2) }
   0xd   : > { %s681_s19 = smov (!%p215_p3, %s500_s19), 1 }
   0xe   : > { %s534_s24 = smul.u32 152, %s681_s19  ;;  %s533_s7 = sshll.u32 %s681_s19, 4 }
   0xf   : > { %s224_s10 = scalar_lea.vmem %s679_s5, %s533_s7 }
  0x10   : > { %s640_s27 = scalar_lea.vmem %s674_s0, %s534_s24 }
  0x11   : > { %v547_v4 = vld [vmem:[%s640_s27 + $0x4] ss:$8 sps:$4 sm:$0xff]   ;;  %v549_v5 = vld [vmem:[%s640_s27] ss:$8 sps:$4 sm:$0xff]   ;;  %v550_v6 = vld [vmem:[%s640_s27 + $0x14] ss:$8 sps:$4 sm:$0xff]  }
  0x12   : > { %367 = vmatprep.subr.bf16.mxu0 %v547_v4  ;;  %v552_v7 = vld [vmem:[%s640_s27 + $0x10] ss:$8 sps:$4 sm:$0xff]   ;;  %v553_v8 = vld [vmem:[%s640_s27 + $0x24] ss:$8 sps:$4 sm:$0xff]   ;;  %v555_v9 = vld [vmem:[%s640_s27 + $0x20] ss:$8 sps:$4 sm:$0xff]  }
  0x13   : > { %368 = vmatpush1.bf16.msra.mxu0 %v549_v5  ;;  %v556_v10 = vld [vmem:[%s640_s27 + $0x34] ss:$8 sps:$4 sm:$0xff]   ;;  %v558_v11 = vld [vmem:[%s640_s27 + $0x30] ss:$8 sps:$4 sm:$0xff]   ;;  %v559_v12 = vld [vmem:[%s640_s27 + $0x44] ss:$8 sps:$4 sm:$0xff]  }
  0x14   : > { %369 = vmatprep.subr.bf16.mxu0 %v550_v6  ;;  %v561_v13 = vld [vmem:[%s640_s27 + $0x40] ss:$8 sps:$4 sm:$0xff]   ;;  %v562_v14 = vld [vmem:[%s640_s27 + $0x54] ss:$8 sps:$4 sm:$0xff]   ;;  %v564_v15 = vld [vmem:[%s640_s27 + $0x50] ss:$8 sps:$4 sm:$0xff]  }
  0x15   : > { %v565_v16 = vld [vmem:[%s640_s27 + $0x64] ss:$8 sps:$4 sm:$0xff]   ;;  %v567_v17 = vld [vmem:[%s640_s27 + $0x60] ss:$8 sps:$4 sm:$0xff]   ;;  %v568_v18 = vld [vmem:[%s640_s27 + $0x74] ss:$8 sps:$4 sm:$0xff]  }
  0x16   : > { %v245_v19 = vld [vmem:[%s640_s27 + $0x90] sm:$0x33]  ;;  %v571_v23 = vld [vmem:[%s640_s27 + $0x84] ss:$8 sps:$4 sm:$0xff]   ;;  %v573_v26 = vld [vmem:[%s640_s27 + $0x80] ss:$8 sps:$4 sm:$0xff]  }
  0x17   : > { %370 = vmatpush1.bf16.msra.mxu0 %v552_v7  ;;  %v570_v22 = vld [vmem:[%s640_s27 + $0x70] ss:$8 sps:$4 sm:$0xff]   ;;  %v529_v24 = vcombine.high %v245_v19, %v245_v19  ;;  %v528_v27 = vcombine.low %v245_v19, %v245_v19 }
  0x18   : > { %371 = vmatprep.subr.bf16.mxu0 %v553_v8 }
  0x19   : > { %v365_v28 = vand.u32 %v529_v24, %v360_v25  ;;  %v362_v29 = vand.u32 %v528_v27, %v360_v25 }
  0x1b   : > { %372 = vmatpush1.bf16.msra.mxu0 %v555_v9 }
  0x1c   : > { %373 = vmatprep.subr.bf16.mxu0 %v556_v10 }
  0x1f   : > { %374 = vmatpush1.bf16.msra.mxu0 %v558_v11 }
  0x20   : > { %375 = vmatprep.subr.bf16.mxu0 %v559_v12 }
  0x23   : > { %376 = vmatpush1.bf16.msra.mxu0 %v561_v13 }
  0x24   : > { %377 = vmatprep.subr.bf16.mxu0 %v562_v14 }
  0x27   : > { %378 = vmatpush1.bf16.msra.mxu0 %v564_v15 }
  0x28   : > { %379 = vmatprep.subr.bf16.mxu0 %v565_v16 }
  0x2b   : > { %380 = vmatpush1.bf16.msra.mxu0 %v567_v17 }
  0x2c   : > { %381 = vmatprep.subr.bf16.mxu0 %v568_v18 }
  0x2f   : > { %382 = vmatpush1.bf16.msra.mxu0 %v570_v22 }
  0x30   : > { %383 = vmatprep.subr.bf16.mxu0 %v571_v23 }
  0x33   : > { %384 = vmatpush1.bf16.msra.mxu0 %v573_v26 }
  0x34   : > { %385 = vmatprep.subr.bf16.mxu0 %v365_v28 }
  0x37   : > { %386 = vmatpush1.bf16.msra.mxu0 %v362_v29 }
  0x3a   : > { %400 = vmatmul.mubr.bf16.vlgmr.msra.gmra.mrb[0].mxu0 %v508_v30 }
  0x86   : > { %v250_v32 = vpop.permute.xlu0 %249 }
  0x87   : > { %v429_v48 = vpop.permute.xlu1 %428 }
 0x10d   : > { %v401_v33 = vpop.f32.mrb[0].mxu0 }
 0x10e   : > { %v402_v34 = vadd.f32 %v401_v33, %v250_v32  ;;  %v403_v35 = vpop.f32.mrb[1].mxu0 }
 0x10f   : > { %v404_v36 = vadd.f32 %v403_v35, %v250_v32  ;;  %v405_v37 = vpop.f32.mrb[2].mxu0 }
 0x110   : > { %v406_v38 = vpop.f32.mrb[3].mxu0 }
 0x111   : > { %v408_v39 = vadd.f32 %v404_v36, %v402_v34 }
 0x113   : > { %409 = vadd.xlane.f32.xlu0 %v408_v39 }
 0x1a0   : > { %v410_v40 = vpop.xlane.xlu0 %409 }
 0x1a1   : > { %v412_v41 = vmul.f32 0.00390625, %v410_v40 }
 0x1a3   : > { %v413_v42 = vsub.f32 %v402_v34, %v412_v41  ;;  %v414_v43 = vsub.f32 %v404_v36, %v412_v41 }
 0x1a5   : > { %v415_v44 = vmul.f32 %v413_v42, %v413_v42  ;;  %v416_v45 = vmul.f32 %v414_v43, %v414_v43 }
 0x1a7   : > { %v417_v46 = vadd.f32 %v416_v45, %v415_v44 }
 0x1a9   : > { %418 = vadd.xlane.f32.xlu1 %v417_v46 }
 0x1ba   : > { %436 = vperm.xlu1 %546, %v433_v47  }
 0x236   : > { %v419_v49 = vpop.xlane.xlu1 %418 }
 0x237   : > { %v420_v50 = vmul.f32 0.00390625, %v419_v49 }
 0x239   : > { %v421_v51 = vadd.f32 1e-05, %v420_v50 }
 0x23a   : > { %v437_v57 = vpop.permute.xlu1 %436 }
 0x23b   : > { %578 = vrsqrt.f32 %v421_v51 }
 0x245   : > { %v579_v52 = vpop.eup %578 }
 0x246   : > { %v423_v53 = vmul.f32 %v579_v52, %v413_v42  ;;  %v424_v54 = vmul.f32 %v579_v52, %v414_v43 }
 0x248   : > { %v431_v55 = vmul.f32 %v429_v48, %v423_v53  ;;  %v432_v56 = vmul.f32 %v429_v48, %v424_v54 }
 0x24a   : > { %v439_v58 = vadd.f32 %v437_v57, %v431_v55  ;;  %v440_v59 = vadd.f32 %v437_v57, %v432_v56 }
 0x24c   : > { %v441_v60 = vmax.f32 %v439_v58, 0.0  ;;  %v442_v61 = vmax.f32 %v440_v59, 0.0 }
 0x24e   : > { %443 = vst [vmem:[%s224_s10] sm:$0xff] %v441_v60  ;;  %444 = vst [vmem:[%s224_s10 + $0x8] sm:$0xff] %v442_v61 }
 0x24f PF: > { %s15_s18 = sadd.s32 1, %s586_s18  }
 0x250   : > { %p12_p4 = scmp.ge.s32.totalorder %s15_s18, 4  }
 0x252   :  { %14 = sbr.rel (!%p12_p4) target bundleno = 1 (0x1), region = 70 }

// kernel: r_recon_forward.11
= control target key start
LH: loop header
LB: loop body
LE: loop exit
PB: predicated region body
PF: predicated region fallthrough
CT: control target
= control target key end

     0   :  { %s548_s18 = smov 0   ;;  %s596_s0 = inlined_call_operand.vmem [shape: bf16[2,72,64], index: 0, kind: input, shape index: {}]   ;;  %s597_s1 = inlined_call_operand.vmem [shape: bf16[16,72], index: 1, kind: input, shape index: {}]   ;;  %s598_s2 = inlined_call_operand.vmem [shape: f32[16,1], index: 2, kind: input, shape index: {}]   ;;  %s599_s3 = inlined_call_operand.vmem [shape: f32[16,1], index: 3, kind: input, shape index: {}]   ;;  %s600_s4 = inlined_call_operand.vmem [shape: f32[16,1], index: 4, kind: input, shape index: {}]   ;;  %s601_s5 = inlined_call_operand.vmem [shape: f32[2,16,64], index: 5, kind: output, shape index: {}]  }
   0x1 LB: > { %s445_s19 = sadd.s32 4294967295, %s513_s18   ;;  %p449_p0 = scmp.ge.s32.totalorder %s513_s18, 1  ;;  %s513_s18 = sphi %s548_s18, %s15_s18  }
   0x2   : > { %p187_p1 = scmp.lt.s32.totalorder %s513_s18, 3 }
   0x4   : > { %p188_p2 = pnand %p449_p0, %p187_p1 }
   0x5   : > { %p215_p3 = scmp.lt.s32.totalorder (!%p188_p2), %s445_s19, 1  ;;  %v515_v0 = vmov (!%p188_p2), 0.0   ;;  %vm516_vm0 = vmmov (!%p188_p2), 0   ;;  %v237_v1 = vld [vmem:[%s598_s2] sm:$0xff] (!%p188_p2)  ;;  %v517_v2 = vmov (!%p188_p2), 0   ;;  %v238_v3 = vld [vmem:[%s598_s2 + $0x8] sm:$0xff] (!%p188_p2) }
   0x6   : > { %191 = sbr.rel (%p188_p2) target bundleno = 571 (0x23b), region = 40  ;;  %469 = vmatprep.subr.bf16.mxu0 (!%p188_p2), %v515_v0  ;;  %479 = vmatprep.mubr.msk.bf16.mxu0 (!%p188_p2), %vm516_vm0, %v515_v0  ;;  %vm285_vm1 = vcmask (!%p188_p2), 1043456   ;;  %v502_v10 = vld [vmem:[%s597_s1] sm:$0xff] (!%p188_p2)   ;;  %vm281_vm2 = vcmask (!%p188_p2), 588800   ;;  %vm330_vm3 = vcmask (!%p188_p2), 523264   ;;  %v359_v22 = vld [vmem:[%s599_s3 + $0x8] sm:$0xff] (!%p188_p2) }
   0x7   : > { %495 = vset.pattern.permute.xlu0 (!%p188_p2), %v517_v2  ;;  %496 = vset.pattern.permute.xlu1 (!%p188_p2), %v517_v2  ;;  %v358_v21 = vld [vmem:[%s599_s3] sm:$0xff] (!%p188_p2)  ;;  %v373_v34 = vld [vmem:[%s600_s4 + $0x8] sm:$0xff] (!%p188_p2) }
   0x8   : > { %241 = vperm.xlu0 (!%p188_p2), %495, %v237_v1   ;;  %v372_v23 = vld [vmem:[%s600_s4] sm:$0xff] (!%p188_p2) }
   0xc   : > { %246 = vperm.xlu0 (!%p188_p2), %495, %v238_v3  }
   0xd   : > { %s603_s19 = smov (!%p215_p3, %s445_s19), 1 }
   0xe   : > { %s483_s22 = smul.u32 36, %s603_s19  ;;  %s462_s13 = sshll.u32 %s603_s19, 4 }
   0xf   : > { %s224_s16 = scalar_lea.vmem %s601_s5, %s462_s13 }
  0x10   : > { %s219_s27 = scalar_lea.vmem %s596_s0, %s483_s22 }
  0x11   : > { %v497_v4 = vld [vmem:[%s219_s27] sm:$0xff]   ;;  %v498_v5 = vld [vmem:[%s219_s27 + $0x8] sm:$0xff]   ;;  %v499_v6 = vld [vmem:[%s219_s27 + $0x10] sm:$0xff]  }
  0x12   : > { %470 = vmatpush3.bf16.msra.mxu0 %v497_v4  ;;  %v500_v7 = vld [vmem:[%s219_s27 + $0x18] sm:$0xff]   ;;  %v501_v8 = vld [vmem:[%s219_s27 + $0x20] ss:$0 sps:$4 sm:$0xff]  }
  0x13   : > { %471 = vmatprep.subr.bf16.mxu0 %v515_v0  ;;  %v287_v9 = vsel %vm285_vm1, %v501_v8, 0 }
  0x16   : > { %472 = vmatpush3.bf16.msra.mxu0 %v498_v5 }
  0x17   : > { %473 = vmatprep.subr.bf16.mxu0 %v515_v0 }
  0x1a   : > { %474 = vmatpush3.bf16.msra.mxu0 %v499_v6 }
  0x1b   : > { %475 = vmatprep.subr.bf16.mxu0 %v515_v0 }
  0x1e   : > { %476 = vmatpush3.bf16.msra.mxu0 %v500_v7 }
  0x1f   : > { %477 = vmatprep.subr.bf16.mxu0 %v515_v0 }
  0x22   : > { %478 = vmatpush3.bf16.msra.mxu0 %v287_v9 }
  0x25   : > { %480 = vmatmul.mubr.msk.bf16.vlgmr.msra.gmra.mrb[0].mxu0 %vm281_vm2, %v502_v10 }
  0x87   : > { %v242_v11 = vpop.permute.xlu0 %241 }
  0x8b   : > { %v247_v15 = vpop.permute.xlu0 %246 }
  0xf8   : > { %v323_v12 = vpop.f32.mrb[0].mxu0 }
  0xf9   : > { %v324_v13 = vadd.f32 %v323_v12, %v242_v11  ;;  %v481_v14 = vpop.f32.mrb[1].mxu0 }
  0xfa   : > { %v326_v16 = vpop.f32.mrb[2].mxu0 }
  0xfb   : > { %v327_v17 = vadd.f32 %v326_v16, %v247_v15  ;;  %v482_v18 = vpop.f32.mrb[3].mxu0  ;;  %v331_v19 = vsel %vm330_vm3, %v324_v13, 0.0 }
  0xfc   : > { %332 = vadd.xlane.f32.xlu1 %v331_v19 }
  0xfd   : > { %v334_v20 = vsel %vm330_vm3, %v327_v17, 0.0 }
 0x100   : > { %335 = vadd.xlane.f32.xlu1 %v334_v20 }
 0x111   : > { %362 = vperm.xlu1 %496, %v358_v21  }
 0x115   : > { %367 = vperm.xlu1 %496, %v359_v22  }
 0x119   : > { %376 = vperm.xlu1 %496, %v372_v23  }
 0x189   : > { %v333_v24 = vpop.xlane.xlu1 %332 }
 0x18a   : > { %v338_v25 = vmul.f32 0.015625, %v333_v24 }
 0x18c   : > { %v340_v26 = vsub.f32 %v324_v13, %v338_v25 }
 0x18d   : > { %v336_v27 = vpop.xlane.xlu1 %335 }
 0x18e   : > { %v339_v28 = vmul.f32 0.015625, %v336_v27  ;;  %v342_v29 = vmul.f32 %v340_v26, %v340_v26 }
 0x190   : > { %v341_v30 = vsub.f32 %v327_v17, %v339_v28  ;;  %v344_v31 = vsel %vm330_vm3, %v342_v29, 0.0 }
 0x191   : > { %345 = vadd.xlane.f32.xlu0 %v344_v31  ;;  %v363_v35 = vpop.permute.xlu1 %362 }
 0x192   : > { %v343_v32 = vmul.f32 %v341_v30, %v341_v30 }
 0x194   : > { %v347_v33 = vsel %vm330_vm3, %v343_v32, 0.0 }
 0x195   : > { %348 = vadd.xlane.f32.xlu1 %v347_v33  ;;  %v368_v36 = vpop.permute.xlu1 %367 }
 0x199   : > { %v377_v37 = vpop.permute.xlu1 %376 }
 0x1a6   : > { %381 = vperm.xlu1 %496, %v373_v34  }
 0x21e   : > { %v346_v38 = vpop.xlane.xlu0 %345 }
 0x21f   : > { %v350_v39 = vmul.f32 0.015625, %v346_v38 }
 0x221   : > { %v352_v40 = vadd.f32 1e-05, %v350_v39 }
 0x222   : > { %v349_v41 = vpop.xlane.xlu1 %348 }
 0x223   : > { %503 = vrsqrt.f32 %v352_v40  ;;  %v351_v42 = vmul.f32 0.015625, %v349_v41 }
 0x225   : > { %v353_v43 = vadd.f32 1e-05, %v351_v42 }
 0x226   : > { %v382_v52 = vpop.permute.xlu1 %381 }
 0x227   : > { %505 = vrsqrt.f32 %v353_v43 }
 0x22d   : > { %v504_v44 = vpop.eup %503 }
 0x22e   : > { %v356_v45 = vmul.f32 %v504_v44, %v340_v26 }
 0x230   : > { %v370_v46 = vmul.f32 %v363_v35, %v356_v45 }
 0x231   : > { %v506_v47 = vpop.eup %505 }
 0x232   : > { %v357_v48 = vmul.f32 %v506_v47, %v341_v30  ;;  %v384_v49 = vadd.f32 %v377_v37, %v370_v46 }
 0x234   : > { %v371_v50 = vmul.f32 %v368_v36, %v357_v48  ;;  %v386_v51 = vmax.f32 %v384_v49, 0.0 }
 0x236   : > { %388 = vst.msk [vmem:[%s224_s16] sm:$0xff] %vm330_vm3, %v386_v51  ;;  %v385_v53 = vadd.f32 %v382_v52, %v371_v50 }
 0x238   : > { %v387_v54 = vmax.f32 %v385_v53, 0.0 }
 0x23a   : > { %389 = vst.msk [vmem:[%s224_s16 + $0x8] sm:$0xff] %vm330_vm3, %v387_v54 }
 0x23b PF: > { %s15_s18 = sadd.s32 1, %s513_s18  }
 0x23c   : > { %p12_p4 = scmp.ge.s32.totalorder %s15_s18, 4  }
 0x23e   :  { %14 = sbr.rel (!%p12_p4) target bundleno = 1 (0x1), region = 70 }

// kernel: r_recon_forward.12
= control target key start
LH: loop header
LB: loop body
LE: loop exit
PB: predicated region body
PF: predicated region fallthrough
CT: control target
= control target key end

     0   :  { %s690_s18 = smov 0   ;;  %s784_s0 = inlined_call_operand.vmem [shape: bf16[2,144,16], index: 0, kind: input, shape index: {}]   ;;  %s785_s1 = inlined_call_operand.vmem [shape: bf16[32,144], index: 1, kind: input, shape index: {}]   ;;  %s786_s2 = inlined_call_operand.vmem [shape: f32[32,1], index: 2, kind: input, shape index: {}]   ;;  %s787_s3 = inlined_call_operand.vmem [shape: f32[32,1], index: 3, kind: input, shape index: {}]   ;;  %s788_s4 = inlined_call_operand.vmem [shape: f32[32,1], index: 4, kind: input, shape index: {}]   ;;  %s789_s5 = inlined_call_operand.vmem [shape: f32[2,32,16], index: 5, kind: output, shape index: {}]  }
   0x1 LB: > { %s572_s19 = sadd.s32 4294967295, %s657_s18   ;;  %p576_p0 = scmp.ge.s32.totalorder %s657_s18, 1  ;;  %s657_s18 = sphi %s690_s18, %s15_s18  }
   0x2   : > { %p187_p1 = scmp.lt.s32.totalorder %s657_s18, 3 }
   0x4   : > { %p188_p2 = pnand %p576_p0, %p187_p1 }
   0x5   : > { %p215_p3 = scmp.lt.s32.totalorder (!%p188_p2), %s572_s19, 1  ;;  %v659_v0 = vmov (!%p188_p2), 0   ;;  %v639_v1 = vld [vmem:[%s785_s1 + $0x4] ss:$8 sps:$4 sm:$0xff] (!%p188_p2)   ;;  %vm344_vm0 = vcmask (!%p188_p2), 130048   ;;  %v250_v4 = vld [vmem:[%s786_s2 + $0x10] sm:$0xff] (!%p188_p2) }
   0x6   : > { %191 = sbr.rel (%p188_p2) target bundleno = 591 (0x24f), region = 40  ;;  %351 = vmatprep.subr.bf16.mxu0 (!%p188_p2), %v659_v0  ;;  %598 = vmatprep.subr.bf16.mxu1 (!%p188_p2), %v659_v0  ;;  %v642_v2 = vld [vmem:[%s785_s1 + $0x14] ss:$8 sps:$4 sm:$0xff] (!%p188_p2)   ;;  %v248_v3 = vld [vmem:[%s786_s2] sm:$0xff] (!%p188_p2)  ;;  %v249_v5 = vld [vmem:[%s786_s2 + $0x8] sm:$0xff] (!%p188_p2) }
   0x7   : > { %626 = vset.pattern.permute.xlu0 (!%p188_p2), %v659_v0  ;;  %627 = vset.pattern.permute.xlu1 (!%p188_p2), %v659_v0  ;;  %v251_v6 = vld [vmem:[%s786_s2 + $0x18] sm:$0xff] (!%p188_p2)  ;;  %v637_v16 = vld [vmem:[%s785_s1] ss:$8 sps:$4 sm:$0xff] (!%p188_p2)   ;;  %v455_v39 = vld [vmem:[%s787_s3 + $0x10] sm:$0xff] (!%p188_p2) }
   0x8   : > { %593 = vmatprep.mubr.msk.bf16.mxu0 (!%p188_p2), %vm344_vm0, %v639_v1  ;;  %254 = vperm.xlu0 (!%p188_p2), %626, %v248_v3   ;;  %v640_v17 = vld [vmem:[%s785_s1 + $0x10] ss:$8 sps:$4 sm:$0xff] (!%p188_p2)   ;;  %v453_v38 = vld [vmem:[%s787_s3] sm:$0xff] (!%p188_p2)  ;;  %v454_v41 = vld [vmem:[%s787_s3 + $0x8] sm:$0xff] (!%p188_p2) }
   0x9   : > { %594 = vmatprep.mubr.msk.bf16.mxu1 (!%p188_p2), %vm344_vm0, %v642_v2  ;;  %264 = vperm.xlu1 (!%p188_p2), %627, %v250_v4   ;;  %v456_v40 = vld [vmem:[%s787_s3 + $0x18] sm:$0xff] (!%p188_p2)  ;;  %v482_v42 = vld [vmem:[%s788_s4 + $0x8] sm:$0xff] (!%p188_p2)  ;;  %v481_v43 = vld [vmem:[%s788_s4] sm:$0xff] (!%p188_p2) }
   0xa   : > { %v483_v1 = vld [vmem:[%s788_s4 + $0x10] sm:$0xff] (!%p188_p2) }
   0xc   : > { %259 = vperm.xlu0 (!%p188_p2), %626, %v249_v5  }
   0xd   : > { %s791_s19 = smov (!%p215_p3, %s572_s19), 1  ;;  %269 = vperm.xlu1 %627, %v251_v6  }
   0xe   : > { %s616_s28 = smul.u32 72, %s791_s19  ;;  %s597_s8 = sshll.u32 %s791_s19, 5 }
   0xf   : > { %s224_s11 = scalar_lea.vmem %s789_s5, %s597_s8 }
  0x10   : > { %s724_s10 = scalar_lea.vmem %s784_s0, %s616_s28 }
  0x11   : > { %v628_v7 = vld [vmem:[%s724_s10] sm:$0xff]   ;;  %v629_v8 = vld [vmem:[%s724_s10 + $0x8] sm:$0xff]   ;;  %v630_v9 = vld [vmem:[%s724_s10 + $0x10] sm:$0xff]  }
  0x12   : > { %352 = vmatpush1.bf16.msra.mxu0 %v628_v7  ;;  %607 = vmatpush1.bf16.msra.mxu1 %v628_v7  ;;  %v631_v10 = vld [vmem:[%s724_s10 + $0x18] sm:$0xff]   ;;  %v632_v11 = vld [vmem:[%s724_s10 + $0x20] sm:$0xff]   ;;  %v633_v12 = vld [vmem:[%s724_s10 + $0x28] sm:$0xff]  }
  0x13   : > { %353 = vmatprep.subr.bf16.mxu0 %v659_v0  ;;  %599 = vmatprep.subr.bf16.mxu1 %v659_v0  ;;  %v634_v13 = vld [vmem:[%s724_s10 + $0x30] sm:$0xff]   ;;  %v635_v14 = vld [vmem:[%s724_s10 + $0x38] sm:$0xff]   ;;  %v636_v15 = vld [vmem:[%s724_s10 + $0x40] sm:$0xff]  }
  0x16   : > { %354 = vmatpush1.bf16.msra.mxu0 %v629_v8  ;;  %608 = vmatpush1.bf16.msra.mxu1 %v629_v8 }
  0x17   : > { %355 = vmatprep.subr.bf16.mxu0 %v659_v0  ;;  %600 = vmatprep.subr.bf16.mxu1 %v659_v0 }
  0x1a   : > { %356 = vmatpush1.bf16.msra.mxu0 %v630_v9  ;;  %609 = vmatpush1.bf16.msra.mxu1 %v630_v9 }
  0x1b   : > { %357 = vmatprep.subr.bf16.mxu0 %v659_v0  ;;  %601 = vmatprep.subr.bf16.mxu1 %v659_v0 }
  0x1e   : > { %358 = vmatpush1.bf16.msra.mxu0 %v631_v10  ;;  %610 = vmatpush1.bf16.msra.mxu1 %v631_v10 }
  0x1f   : > { %359 = vmatprep.subr.bf16.mxu0 %v659_v0  ;;  %602 = vmatprep.subr.bf16.mxu1 %v659_v0 }
  0x22   : > { %360 = vmatpush1.bf16.msra.mxu0 %v632_v11  ;;  %611 = vmatpush1.bf16.msra.mxu1 %v632_v11 }
  0x23   : > { %361 = vmatprep.subr.bf16.mxu0 %v659_v0  ;;  %603 = vmatprep.subr.bf16.mxu1 %v659_v0 }
  0x26   : > { %362 = vmatpush1.bf16.msra.mxu0 %v633_v12  ;;  %612 = vmatpush1.bf16.msra.mxu1 %v633_v12 }
  0x27   : > { %363 = vmatprep.subr.bf16.mxu0 %v659_v0  ;;  %604 = vmatprep.subr.bf16.mxu1 %v659_v0 }
  0x2a   : > { %364 = vmatpush1.bf16.msra.mxu0 %v634_v13  ;;  %613 = vmatpush1.bf16.msra.mxu1 %v634_v13 }
  0x2b   : > { %365 = vmatprep.subr.bf16.mxu0 %v659_v0  ;;  %605 = vmatprep.subr.bf16.mxu1 %v659_v0 }
  0x2e   : > { %366 = vmatpush1.bf16.msra.mxu0 %v635_v14  ;;  %614 = vmatpush1.bf16.msra.mxu1 %v635_v14 }
  0x2f   : > { %367 = vmatprep.subr.bf16.mxu0 %v659_v0  ;;  %606 = vmatprep.subr.bf16.mxu1 %v659_v0  ;;  %v484_v0 = vld [vmem:[%s788_s4 + $0x18] sm:$0xff] }
  0x32   : > { %368 = vmatpush1.bf16.msra.mxu0 %v636_v15  ;;  %615 = vmatpush1.bf16.msra.mxu1 %v636_v15 }
  0x35   : > { %384 = vmatmul.mubr.bf16.vlgmr.msra.gmra.mrb[0].mxu0 %v637_v16  ;;  %392 = vmatmul.mubr.bf16.vlgmr.msra.gmra.mrb[0].mxu1 %v640_v17 }
  0x87   : > { %v255_v18 = vpop.permute.xlu0 %254 }
  0x88   : > { %v265_v19 = vpop.permute.xlu1 %264 }
  0x8b   : > { %v260_v20 = vpop.permute.xlu0 %259 }
  0x8c   : > { %v270_v33 = vpop.permute.xlu1 %269 }
 0x108   : > { %v385_v21 = vpop.f32.mrb[0].mxu0  ;;  %v393_v22 = vpop.f32.mrb[0].mxu1 }
 0x109   : > { %v386_v23 = vadd.f32 %v385_v21, %v255_v18  ;;  %v387_v24 = vpop.f32.mrb[1].mxu0  ;;  %v394_v25 = vadd.f32 %v393_v22, %v265_v19  ;;  %v395_v26 = vpop.f32.mrb[1].mxu1 }
 0x10a   : > { %v388_v27 = vpop.f32.mrb[2].mxu0  ;;  %v396_v28 = vpop.f32.mrb[2].mxu1 }
 0x10b   : > { %v389_v29 = vadd.f32 %v388_v27, %v260_v20  ;;  %v390_v30 = vpop.f32.mrb[3].mxu0  ;;  %v398_v31 = vpop.f32.mrb[3].mxu1  ;;  %v400_v32 = vsel %vm344_vm0, %v386_v23, 0.0  ;;  %v406_v35 = vsel %vm344_vm0, %v394_v25, 0.0  ;;  %v397_v36 = vadd.f32 %v396_v28, %v270_v33 }
 0x10c   : > { %401 = vadd.xlane.f32.xlu0 %v400_v32 }
 0x10d   : > { %v403_v34 = vsel %vm344_vm0, %v389_v29, 0.0  ;;  %v409_v37 = vsel %vm344_vm0, %v397_v36, 0.0 }
 0x10e   : > { %404 = vadd.xlane.f32.xlu1 %v403_v34 }
 0x110   : > { %407 = vadd.xlane.f32.xlu0 %v406_v35 }
 0x114   : > { %410 = vadd.xlane.f32.xlu0 %v409_v37 }
 0x11f   : > { %459 = vperm.xlu1 %627, %v453_v38  }
 0x123   : > { %469 = vperm.xlu1 %627, %v455_v39  }
 0x127   : > { %474 = vperm.xlu1 %627, %v456_v40  }
 0x12a   : > { %464 = vperm.xlu0 %626, %v454_v41  }
 0x12b   : > { %492 = vperm.xlu1 %627, %v482_v42  }
 0x12e   : > { %487 = vperm.xlu0 %626, %v481_v43  }
 0x199   : > { %v402_v44 = vpop.xlane.xlu0 %401 }
 0x19a   : > { %v413_v45 = vmul.f32 0.0625, %v402_v44 }
 0x19b   : > { %v405_v46 = vpop.xlane.xlu1 %404 }
 0x19c   : > { %v417_v47 = vsub.f32 %v386_v23, %v413_v45  ;;  %v414_v48 = vmul.f32 0.0625, %v405_v46 }
 0x19d   : > { %v408_v49 = vpop.xlane.xlu0 %407 }
 0x19e   : > { %v418_v50 = vsub.f32 %v389_v29, %v414_v48  ;;  %v415_v51 = vmul.f32 0.0625, %v408_v49  ;;  %v421_v52 = vmul.f32 %v417_v47, %v417_v47 }
 0x19f   : > { %v460_v2 = vpop.permute.xlu1 %459 }
 0x1a0   : > { %v419_v53 = vsub.f32 %v394_v25, %v415_v51  ;;  %v425_v54 = vsel %vm344_vm0, %v421_v52, 0.0  ;;  %v422_v55 = vmul.f32 %v418_v50, %v418_v50 }
 0x1a1   : > { %426 = vadd.xlane.f32.xlu1 %v425_v54  ;;  %v411_v56 = vpop.xlane.xlu0 %410 }
 0x1a2   : > { %v416_v57 = vmul.f32 0.0625, %v411_v56  ;;  %v428_v58 = vsel %vm344_vm0, %v422_v55, 0.0  ;;  %v423_v59 = vmul.f32 %v419_v53, %v419_v53 }
 0x1a3   : > { %429 = vadd.xlane.f32.xlu0 %v428_v58  ;;  %v470_v3 = vpop.permute.xlu1 %469 }
 0x1a4   : > { %v420_v60 = vsub.f32 %v397_v36, %v416_v57  ;;  %v431_v61 = vsel %vm344_vm0, %v423_v59, 0.0 }
 0x1a5   : > { %432 = vadd.xlane.f32.xlu1 %v431_v61 }
 0x1a6   : > { %v424_v62 = vmul.f32 %v420_v60, %v420_v60 }
 0x1a7   : > { %v475_v4 = vpop.permute.xlu1 %474 }
 0x1a8   : > { %v434_v63 = vsel %vm344_vm0, %v424_v62, 0.0 }
 0x1a9   : > { %435 = vadd.xlane.f32.xlu0 %v434_v63  ;;  %v465_v5 = vpop.permute.xlu0 %464 }
 0x1ab   : > { %v493_v6 = vpop.permute.xlu1 %492 }
 0x1ad   : > { %v488_v7 = vpop.permute.xlu0 %487 }
 0x1b6   : > { %502 = vperm.xlu1 %627, %v484_v0  }
 0x1bf   : > { %497 = vperm.xlu0 %626, %v483_v1  }
 0x22e   : > { %v427_v8 = vpop.xlane.xlu1 %426 }
 0x22f   : > { %v437_v9 = vmul.f32 0.0625, %v427_v8 }
 0x230   : > { %v430_v10 = vpop.xlane.xlu0 %429 }
 0x231   : > { %v441_v11 = vadd.f32 1e-05, %v437_v9  ;;  %v438_v12 = vmul.f32 0.0625, %v430_v10 }
 0x232   : > { %v433_v13 = vpop.xlane.xlu1 %432 }
 0x233   : > { %643 = vrsqrt.f32 %v441_v11  ;;  %v442_v14 = vadd.f32 1e-05, %v438_v12  ;;  %v439_v15 = vmul.f32 0.0625, %v433_v13 }
 0x235   : > { %645 = vrsqrt.f32 %v442_v14  ;;  %v443_v16 = vadd.f32 1e-05, %v439_v15 }
 0x236   : > { %v436_v17 = vpop.xlane.xlu0 %435  ;;  %v503_v39 = vpop.permute.xlu1 %502 }
 0x237   : > { %647 = vrsqrt.f32 %v443_v16  ;;  %v440_v18 = vmul.f32 0.0625, %v436_v17 }
 0x239   : > { %v444_v19 = vadd.f32 1e-05, %v440_v18 }
 0x23b   : > { %649 = vrsqrt.f32 %v444_v19 }
 0x23d   : > { %v644_v20 = vpop.eup %643 }
 0x23e   : > { %v449_v21 = vmul.f32 %v644_v20, %v417_v47  ;;  %v498_v33 = vpop.permute.xlu0 %497 }
 0x23f   : > { %v646_v22 = vpop.eup %645 }
 0x240   : > { %v477_v23 = vmul.f32 %v460_v2, %v449_v21  ;;  %v450_v24 = vmul.f32 %v646_v22, %v418_v50 }
 0x241   : > { %v648_v25 = vpop.eup %647 }
 0x242   : > { %v505_v26 = vadd.f32 %v488_v7, %v477_v23  ;;  %v478_v27 = vmul.f32 %v465_v5, %v450_v24  ;;  %v451_v28 = vmul.f32 %v648_v25, %v419_v53 }
 0x244   : > { %v509_v29 = vmax.f32 %v505_v26, 0.0  ;;  %v506_v30 = vadd.f32 %v493_v6, %v478_v27  ;;  %v479_v31 = vmul.f32 %v470_v3, %v451_v28 }
 0x245   : > { %v650_v32 = vpop.eup %649 }
 0x246   : > { %v510_v34 = vmax.f32 %v506_v30, 0.0  ;;  %v452_v35 = vmul.f32 %v650_v32, %v420_v60  ;;  %513 = vst.msk [vmem:[%s224_s11] sm:$0xff] %vm344_vm0, %v509_v29  ;;  %v507_v36 = vadd.f32 %v498_v33, %v479_v31 }
 0x248   : > { %v480_v37 = vmul.f32 %v475_v4, %v452_v35  ;;  %514 = vst.msk [vmem:[%s224_s11 + $0x8] sm:$0xff] %vm344_vm0, %v510_v34  ;;  %v511_v38 = vmax.f32 %v507_v36, 0.0 }
 0x24a   : > { %v508_v40 = vadd.f32 %v503_v39, %v480_v37  ;;  %515 = vst.msk [vmem:[%s224_s11 + $0x10] sm:$0xff] %vm344_vm0, %v511_v38 }
 0x24c   : > { %v512_v41 = vmax.f32 %v508_v40, 0.0 }
 0x24e   : > { %516 = vst.msk [vmem:[%s224_s11 + $0x18] sm:$0xff] %vm344_vm0, %v512_v41 }
 0x24f PF: > { %s15_s18 = sadd.s32 1, %s657_s18  }
 0x250   : > { %p12_p4 = scmp.ge.s32.totalorder %s15_s18, 4  }
 0x252   :  { %14 = sbr.rel (!%p12_p4) target bundleno = 1 (0x1), region = 70 }

// kernel: r_recon_forward.13
= control target key start
LH: loop header
LB: loop body
LE: loop exit
PB: predicated region body
PF: predicated region fallthrough
CT: control target
= control target key end

     0   :  { %s872_s18 = smov 0   ;;  %s981_s0 = inlined_call_operand.vmem [shape: bf16[2,288,16], index: 0, kind: input, shape index: {}]   ;;  %s982_s1 = inlined_call_operand.vmem [shape: bf16[32,288], index: 1, kind: input, shape index: {}]   ;;  %s983_s2 = inlined_call_operand.vmem [shape: f32[32,1], index: 2, kind: input, shape index: {}]   ;;  %s984_s3 = inlined_call_operand.vmem [shape: f32[32,1], index: 3, kind: input, shape index: {}]   ;;  %s985_s4 = inlined_call_operand.vmem [shape: f32[32,1], index: 4, kind: input, shape index: {}]   ;;  %s986_s5 = inlined_call_operand.vmem [shape: f32[2,32,16], index: 5, kind: output, shape index: {}]  }
   0x1 LB: > { %s710_s19 = sadd.s32 4294967295, %s839_s18   ;;  %p714_p0 = scmp.ge.s32.totalorder %s839_s18, 1  ;;  %s839_s18 = sphi %s872_s18, %s15_s18  }
   0x2   : > { %p187_p1 = scmp.lt.s32.totalorder %s839_s18, 3 }
   0x4   : > { %p188_p2 = pnand %p714_p0, %p187_p1 }
   0x5   : > { %p215_p3 = scmp.lt.s32.totalorder (!%p188_p2), %s710_s19, 1  ;;  %vm432_vm0 = vcmask (!%p188_p2), 261120   ;;  %v818_v0 = vld [vmem:[%s982_s1 + $0x4] ss:$12 sps:$4 sm:$0xff] (!%p188_p2)   ;;  %v820_v1 = vld [vmem:[%s982_s1 + $0x8] ss:$12 sps:$4 sm:$0xff] (!%p188_p2)  }
   0x6   : > { %191 = sbr.rel (%p188_p2) target bundleno = 597 (0x255), region = 40  ;;  %471 = vmatprep.mubr.bf16.mxu0 (!%p188_p2), %v818_v0  ;;  %783 = vmatprep.mubr.msk.bf16.mxu1 (!%p188_p2), %vm432_vm0, %v820_v1  ;;  %v841_v2 = vmov (!%p188_p2), 0   ;;  %v270_v3 = vld [vmem:[%s983_s2] sm:$0xff] (!%p188_p2)  ;;  %v272_v4 = vld [vmem:[%s983_s2 + $0x10] sm:$0xff] (!%p188_p2)  ;;  %v271_v5 = vld [vmem:[%s983_s2 + $0x8] sm:$0xff] (!%p188_p2)  ;;  %vm537_vm1 = vcmask (!%p188_p2), 130048  }
   0x7   : > { %797 = vset.pattern.permute.xlu0 (!%p188_p2), %v841_v2  ;;  %798 = vset.pattern.permute.xlu1 (!%p188_p2), %v841_v2  ;;  %v273_v6 = vld [vmem:[%s983_s2 + $0x18] sm:$0xff] (!%p188_p2)  ;;  %v821_v22 = vld [vmem:[%s982_s1 + $0x20] ss:$12 sps:$4 sm:$0xff] (!%p188_p2)   ;;  %v593_v62 = vld [vmem:[%s984_s3 + $0x10] sm:$0xff] (!%p188_p2) }
   0x8   : > { %276 = vperm.xlu0 (!%p188_p2), %797, %v270_v3   ;;  %286 = vperm.xlu1 (!%p188_p2), %798, %v272_v4   ;;  %v816_v26 = vld [vmem:[%s982_s1] ss:$12 sps:$4 sm:$0xff] (!%p188_p2)   ;;  %v822_v27 = vld [vmem:[%s982_s1 + $0x1c] ss:$12 sps:$4 sm:$0xff] (!%p188_p2)   ;;  %v824_v28 = vld [vmem:[%s982_s1 + $0x18] ss:$12 sps:$4 sm:$0xff] (!%p188_p2)  }
   0x9   : > { %v591_v61 = vld [vmem:[%s984_s3] sm:$0xff] (!%p188_p2)  ;;  %v594_v63 = vld [vmem:[%s984_s3 + $0x18] sm:$0xff] (!%p188_p2)  ;;  %v620_v0 = vld [vmem:[%s985_s4 + $0x8] sm:$0xff] (!%p188_p2) }
   0xa   : > { %v592_v1 = vld [vmem:[%s984_s3 + $0x8] sm:$0xff] (!%p188_p2)  ;;  %v619_v2 = vld [vmem:[%s985_s4] sm:$0xff] (!%p188_p2) }
   0xc   : > { %281 = vperm.xlu0 (!%p188_p2), %797, %v271_v5   ;;  %291 = vperm.xlu1 (!%p188_p2), %798, %v273_v6  }
   0xd   : > { %s988_s19 = smov (!%p215_p3, %s710_s19), 1 }
   0xe   : > { %s787_s24 = smul.u32 144, %s988_s19  ;;  %s746_s12 = sshll.u32 %s988_s19, 5 }
   0xf   : > { %s224_s15 = scalar_lea.vmem %s986_s5, %s746_s12 }
  0x10   : > { %s899_s6 = scalar_lea.vmem %s981_s0, %s787_s24 }
  0x11   : > { %v799_v7 = vld [vmem:[%s899_s6 + $0x40] sm:$0xff]   ;;  %v801_v9 = vld [vmem:[%s899_s6 + $0x48] sm:$0xff]   ;;  %v803_v11 = vld [vmem:[%s899_s6 + $0x50] sm:$0xff]  }
  0x12   : > { %v800_v8 = vld [vmem:[%s899_s6] sm:$0xff]   ;;  %747 = vmatprep.subr.bf16.mxu0 %v799_v7  ;;  %v802_v10 = vld [vmem:[%s899_s6 + $0x8] sm:$0xff]   ;;  %v804_v12 = vld [vmem:[%s899_s6 + $0x10] sm:$0xff]  }
  0x13   : > { %748 = vmatpush3.bf16.msra.mxu0 %v800_v8  ;;  %v805_v13 = vld [vmem:[%s899_s6 + $0x58] sm:$0xff]   ;;  %v807_v15 = vld [vmem:[%s899_s6 + $0x60] sm:$0xff]   ;;  %v809_v18 = vld [vmem:[%s899_s6 + $0x68] sm:$0xff]  }
  0x14   : > { %749 = vmatprep.subr.bf16.mxu0 %v801_v9  ;;  %v806_v14 = vld [vmem:[%s899_s6 + $0x18] sm:$0xff]   ;;  %v808_v16 = vld [vmem:[%s899_s6 + $0x20] sm:$0xff]   ;;  %v819_v19 = vld [vmem:[%s899_s6 + $0x88] sm:$0xff]  }
  0x15   : > { %v814_v17 = vld [vmem:[%s899_s6 + $0x80] sm:$0xff]   ;;  %v810_v20 = vld [vmem:[%s899_s6 + $0x28] sm:$0xff]   ;;  %v811_v21 = vld [vmem:[%s899_s6 + $0x70] sm:$0xff]  }
  0x16   : > { %779 = vmatprep.subr.bf16.mxu1 %v814_v17  ;;  %v812_v23 = vld [vmem:[%s899_s6 + $0x30] sm:$0xff]   ;;  %v813_v24 = vld [vmem:[%s899_s6 + $0x78] sm:$0xff]  }
  0x17   : > { %750 = vmatpush3.bf16.msra.mxu0 %v802_v10  ;;  %780 = vmatpush3.bf16.msra.mxu1 %v814_v17  ;;  %v815_v25 = vld [vmem:[%s899_s6 + $0x38] sm:$0xff]  }
  0x18   : > { %751 = vmatprep.subr.bf16.mxu0 %v803_v11  ;;  %781 = vmatprep.subr.bf16.mxu1 %v819_v19 }
  0x1b   : > { %752 = vmatpush3.bf16.msra.mxu0 %v804_v12  ;;  %782 = vmatpush3.bf16.msra.mxu1 %v819_v19 }
  0x1c   : > { %753 = vmatprep.subr.bf16.mxu0 %v805_v13 }
  0x1e   : > { %784 = vmatmul.mubr.msk.bf16.vlgmr.msra.gmra.mrb[0].mxu1 %vm432_vm0, %v821_v22 }
  0x1f   : > { %754 = vmatpush3.bf16.msra.mxu0 %v806_v14 }
  0x20   : > { %755 = vmatprep.subr.bf16.mxu0 %v807_v15 }
  0x23   : > { %756 = vmatpush3.bf16.msra.mxu0 %v808_v16 }
  0x24   : > { %757 = vmatprep.subr.bf16.mxu0 %v809_v18 }
  0x27   : > { %758 = vmatpush3.bf16.msra.mxu0 %v810_v20 }
  0x28   : > { %759 = vmatprep.subr.bf16.mxu0 %v811_v21 }
  0x2b   : > { %760 = vmatpush3.bf16.msra.mxu0 %v812_v23  ;;  %v622_v23 = vld [vmem:[%s985_s4 + $0x18] sm:$0xff] }
  0x2c   : > { %761 = vmatprep.subr.bf16.mxu0 %v813_v24  ;;  %v621_v24 = vld [vmem:[%s985_s4 + $0x10] sm:$0xff] }
  0x2f   : > { %762 = vmatpush3.bf16.msra.mxu0 %v815_v25 }
  0x32   : > { %472 = vmatmul.mubr.bf16.vlgmr.msra.gmra.mrb[0].mxu0 %v816_v26 }
  0x33   : > { %479 = vmatprep.mubr.bf16.mxu0 %v822_v27 }
  0x3a   : > { %480 = vmatmul.mubr.bf16.gmra.mrb[4].mxu0 %v824_v28 }
  0x87   : > { %v277_v33 = vpop.permute.xlu0 %276  ;;  %v287_v44 = vpop.permute.xlu1 %286 }
  0x8b   : > { %v282_v39 = vpop.permute.xlu0 %281  ;;  %v292_v55 = vpop.permute.xlu1 %291 }
  0xf1   : > { %v785_v29 = vpop.f32.mrb[0].mxu1 }
  0xf2   : > { %v522_v30 = vpop.f32.mrb[1].mxu1 }
  0xf3   : > { %v786_v31 = vpop.f32.mrb[2].mxu1 }
  0xf4   : > { %v525_v32 = vpop.f32.mrb[3].mxu1 }
 0x105   : > { %v763_v34 = vpop.f32.mrb[0].mxu0 }
 0x106   : > { %v764_v35 = vpop.f32.mrb[1].mxu0 }
 0x107   : > { %v765_v36 = vadd.f32 %v764_v35, %v763_v34  ;;  %v766_v37 = vpop.f32.mrb[2].mxu0 }
 0x108   : > { %v767_v38 = vpop.f32.mrb[3].mxu0 }
 0x109   : > { %v768_v40 = vadd.f32 %v767_v38, %v766_v37  ;;  %v474_v41 = vadd.f32 %v765_v36, %v277_v33 }
 0x10b   : > { %v477_v42 = vadd.f32 %v768_v40, %v282_v39  ;;  %v523_v43 = vadd.f32 %v522_v30, %v474_v41 }
 0x10d   : > { %v526_v45 = vadd.f32 %v525_v32, %v477_v42  ;;  %v769_v46 = vpop.f32.mrb[4].mxu0  ;;  %v538_v47 = vsel %vm537_vm1, %v523_v43, 0.0 }
 0x10e   : > { %v770_v48 = vpop.f32.mrb[5].mxu0  ;;  %539 = vadd.xlane.f32.xlu0 %v538_v47 }
 0x10f   : > { %v771_v49 = vadd.f32 %v770_v48, %v769_v46  ;;  %v772_v50 = vpop.f32.mrb[6].mxu0  ;;  %v541_v51 = vsel %vm537_vm1, %v526_v45, 0.0 }
 0x110   : > { %v773_v52 = vpop.f32.mrb[7].mxu0  ;;  %542 = vadd.xlane.f32.xlu1 %v541_v51 }
 0x111   : > { %v482_v53 = vadd.f32 %v771_v49, %v287_v44  ;;  %v774_v54 = vadd.f32 %v773_v52, %v772_v50 }
 0x113   : > { %v485_v56 = vadd.f32 %v774_v54, %v292_v55  ;;  %v531_v57 = vadd.f32 %v785_v29, %v482_v53 }
 0x115   : > { %v544_v58 = vsel %vm537_vm1, %v531_v57, 0.0  ;;  %v534_v59 = vadd.f32 %v786_v31, %v485_v56 }
 0x116   : > { %545 = vadd.xlane.f32.xlu0 %v544_v58 }
 0x117   : > { %v547_v60 = vsel %vm537_vm1, %v534_v59, 0.0 }
 0x11a   : > { %548 = vadd.xlane.f32.xlu0 %v547_v60 }
 0x121   : > { %597 = vperm.xlu1 %798, %v591_v61  }
 0x125   : > { %607 = vperm.xlu1 %798, %v593_v62  }
 0x129   : > { %612 = vperm.xlu1 %798, %v594_v63  }
 0x12d   : > { %630 = vperm.xlu1 %798, %v620_v0  }
 0x130   : > { %602 = vperm.xlu0 %797, %v592_v1  }
 0x134   : > { %625 = vperm.xlu0 %797, %v619_v2  }
 0x19b   : > { %v540_v3 = vpop.xlane.xlu0 %539 }
 0x19c   : > { %v551_v4 = vmul.f32 0.0625, %v540_v3 }
 0x19d   : > { %v543_v5 = vpop.xlane.xlu1 %542 }
 0x19e   : > { %v555_v6 = vsub.f32 %v523_v43, %v551_v4  ;;  %v552_v7 = vmul.f32 0.0625, %v543_v5 }
 0x1a0   : > { %v556_v8 = vsub.f32 %v526_v45, %v552_v7  ;;  %v559_v9 = vmul.f32 %v555_v6, %v555_v6 }
 0x1a1   : > { %v598_v25 = vpop.permute.xlu1 %597 }
 0x1a2   : > { %v563_v10 = vsel %vm537_vm1, %v559_v9, 0.0  ;;  %v560_v11 = vmul.f32 %v556_v8, %v556_v8 }
 0x1a3   : > { %564 = vadd.xlane.f32.xlu1 %v563_v10  ;;  %v546_v12 = vpop.xlane.xlu0 %545 }
 0x1a4   : > { %v553_v13 = vmul.f32 0.0625, %v546_v12  ;;  %v566_v14 = vsel %vm537_vm1, %v560_v11, 0.0 }
 0x1a5   : > { %567 = vadd.xlane.f32.xlu0 %v566_v14  ;;  %v608_v26 = vpop.permute.xlu1 %607 }
 0x1a6   : > { %v557_v15 = vsub.f32 %v531_v57, %v553_v13 }
 0x1a7   : > { %v549_v16 = vpop.xlane.xlu0 %548 }
 0x1a8   : > { %v554_v17 = vmul.f32 0.0625, %v549_v16  ;;  %v561_v18 = vmul.f32 %v557_v15, %v557_v15 }
 0x1a9   : > { %v613_v27 = vpop.permute.xlu1 %612 }
 0x1aa   : > { %v558_v19 = vsub.f32 %v534_v59, %v554_v17  ;;  %v569_v20 = vsel %vm537_vm1, %v561_v18, 0.0 }
 0x1ab   : > { %570 = vadd.xlane.f32.xlu1 %v569_v20 }
 0x1ac   : > { %v562_v21 = vmul.f32 %v558_v19, %v558_v19 }
 0x1ad   : > { %v631_v29 = vpop.permute.xlu1 %630 }
 0x1ae   : > { %v572_v22 = vsel %vm537_vm1, %v562_v21, 0.0 }
 0x1af   : > { %573 = vadd.xlane.f32.xlu0 %v572_v22  ;;  %v603_v28 = vpop.permute.xlu0 %602 }
 0x1b3   : > { %v626_v30 = vpop.permute.xlu0 %625 }
 0x1bc   : > { %640 = vperm.xlu1 %798, %v622_v23  }
 0x1c5   : > { %635 = vperm.xlu0 %797, %v621_v24  }
 0x230   : > { %v565_v31 = vpop.xlane.xlu1 %564 }
 0x231   : > { %v575_v32 = vmul.f32 0.0625, %v565_v31 }
 0x232   : > { %v568_v33 = vpop.xlane.xlu0 %567 }
 0x233   : > { %v579_v34 = vadd.f32 1e-05, %v575_v32  ;;  %v576_v35 = vmul.f32 0.0625, %v568_v33 }
 0x235   : > { %825 = vrsqrt.f32 %v579_v34  ;;  %v580_v36 = vadd.f32 1e-05, %v576_v35 }
 0x237   : > { %827 = vrsqrt.f32 %v580_v36 }
 0x238   : > { %v571_v37 = vpop.xlane.xlu1 %570 }
 0x239   : > { %v577_v38 = vmul.f32 0.0625, %v571_v37 }
 0x23b   : > { %v581_v39 = vadd.f32 1e-05, %v577_v38 }
 0x23c   : > { %v574_v40 = vpop.xlane.xlu0 %573  ;;  %v641_v62 = vpop.permute.xlu1 %640 }
 0x23d   : > { %829 = vrsqrt.f32 %v581_v39  ;;  %v578_v41 = vmul.f32 0.0625, %v574_v40 }
 0x23f   : > { %v826_v42 = vpop.eup %825  ;;  %v582_v43 = vadd.f32 1e-05, %v578_v41 }
 0x240   : > { %v587_v44 = vmul.f32 %v826_v42, %v555_v6 }
 0x241   : > { %v828_v45 = vpop.eup %827  ;;  %831 = vrsqrt.f32 %v582_v43 }
 0x242   : > { %v615_v46 = vmul.f32 %v598_v25, %v587_v44  ;;  %v588_v47 = vmul.f32 %v828_v45, %v556_v8 }
 0x244   : > { %v643_v48 = vadd.f32 %v626_v30, %v615_v46  ;;  %v616_v49 = vmul.f32 %v603_v28, %v588_v47  ;;  %v636_v57 = vpop.permute.xlu0 %635 }
 0x246   : > { %v647_v50 = vmax.f32 %v643_v48, 0.0  ;;  %v644_v51 = vadd.f32 %v631_v29, %v616_v49 }
 0x247   : > { %v830_v52 = vpop.eup %829 }
 0x248   : > { %v648_v53 = vmax.f32 %v644_v51, 0.0  ;;  %v589_v54 = vmul.f32 %v830_v52, %v557_v15  ;;  %651 = vst.msk [vmem:[%s224_s15] sm:$0xff] %vm537_vm1, %v647_v50 }
 0x24a   : > { %v617_v55 = vmul.f32 %v608_v26, %v589_v54  ;;  %652 = vst.msk [vmem:[%s224_s15 + $0x8] sm:$0xff] %vm537_vm1, %v648_v53 }
 0x24b   : > { %v832_v56 = vpop.eup %831 }
 0x24c   : > { %v590_v58 = vmul.f32 %v832_v56, %v558_v19  ;;  %v645_v59 = vadd.f32 %v636_v57, %v617_v55 }
 0x24e   : > { %v618_v60 = vmul.f32 %v613_v27, %v590_v58  ;;  %v649_v61 = vmax.f32 %v645_v59, 0.0 }
 0x250   : > { %v646_v63 = vadd.f32 %v641_v62, %v618_v60  ;;  %653 = vst.msk [vmem:[%s224_s15 + $0x10] sm:$0xff] %vm537_vm1, %v649_v61 }
 0x252   : > { %v650_v0 = vmax.f32 %v646_v63, 0.0 }
 0x254   : > { %654 = vst.msk [vmem:[%s224_s15 + $0x18] sm:$0xff] %vm537_vm1, %v650_v0 }
 0x255 PF: > { %s15_s18 = sadd.s32 1, %s839_s18  }
 0x256   : > { %p12_p4 = scmp.ge.s32.totalorder %s15_s18, 4  }
 0x258   :  { %14 = sbr.rel (!%p12_p4) target bundleno = 1 (0x1), region = 70 }

// kernel: r_recon_forward.14
= control target key start
LH: loop header
LB: loop body
LE: loop exit
PB: predicated region body
PF: predicated region fallthrough
CT: control target
= control target key end

     0   :  { %s943_s21 = smov 0   ;;  %s1055_s0 = inlined_call_operand.vmem [shape: bf16[2,288,16], index: 0, kind: input, shape index: {}]   ;;  %s1056_s1 = inlined_call_operand.vmem [shape: bf16[32,288], index: 1, kind: input, shape index: {}]   ;;  %s1057_s2 = inlined_call_operand.vmem [shape: f32[32,1], index: 2, kind: input, shape index: {}]   ;;  %s1058_s3 = inlined_call_operand.vmem [shape: f32[32,1], index: 3, kind: input, shape index: {}]   ;;  %s1059_s4 = inlined_call_operand.vmem [shape: f32[32,1], index: 4, kind: input, shape index: {}]   ;;  %s1060_s5 = inlined_call_operand.vmem [shape: f32[2,32,16], index: 5, kind: input, shape index: {}]   ;;  %s1061_s6 = inlined_call_operand.vmem [shape: f32[2,32,16], index: 6, kind: output, shape index: {}]  }
   0x1 LB: > { %s773_s22 = sadd.s32 4294967295, %s905_s21   ;;  %p777_p0 = scmp.ge.s32.totalorder %s905_s21, 1  ;;  %s905_s21 = sphi %s943_s21, %s16_s21  }
   0x2   : > { %p222_p1 = scmp.lt.s32.totalorder %s905_s21, 3 }
   0x4   : > { %p223_p2 = pnand %p777_p0, %p222_p1 }
   0x5   : > { %p257_p3 = scmp.lt.s32.totalorder (!%p223_p2), %s773_s22, 1  ;;  %vm479_vm0 = vcmask (!%p223_p2), 261120   ;;  %v884_v0 = vld [vmem:[%s1056_s1 + $0x4] ss:$12 sps:$4 sm:$0xff] (!%p223_p2)   ;;  %v886_v1 = vld [vmem:[%s1056_s1 + $0x8] ss:$12 sps:$4 sm:$0xff] (!%p223_p2)  }
   0x6   : > { %226 = sbr.rel (%p223_p2) target bundleno = 597 (0x255), region = 44  ;;  %518 = vmatprep.mubr.bf16.mxu0 (!%p223_p2), %v884_v0  ;;  %849 = vmatprep.mubr.msk.bf16.mxu1 (!%p223_p2), %vm479_vm0, %v886_v1  ;;  %v907_v2 = vmov (!%p223_p2), 0   ;;  %v317_v3 = vld [vmem:[%s1057_s2] sm:$0xff] (!%p223_p2)  ;;  %v319_v4 = vld [vmem:[%s1057_s2 + $0x10] sm:$0xff] (!%p223_p2)  ;;  %v318_v5 = vld [vmem:[%s1057_s2 + $0x8] sm:$0xff] (!%p223_p2)  ;;  %vm584_vm1 = vcmask (!%p223_p2), 130048  }
   0x7   : > { %863 = vset.pattern.permute.xlu0 (!%p223_p2), %v907_v2  ;;  %864 = vset.pattern.permute.xlu1 (!%p223_p2), %v907_v2  ;;  %v320_v6 = vld [vmem:[%s1057_s2 + $0x18] sm:$0xff] (!%p223_p2)  ;;  %v887_v22 = vld [vmem:[%s1056_s1 + $0x20] ss:$12 sps:$4 sm:$0xff] (!%p223_p2)   ;;  %v640_v62 = vld [vmem:[%s1058_s3 + $0x10] sm:$0xff] (!%p223_p2) }
   0x8   : > { %323 = vperm.xlu0 (!%p223_p2), %863, %v317_v3   ;;  %333 = vperm.xlu1 (!%p223_p2), %864, %v319_v4   ;;  %v882_v26 = vld [vmem:[%s1056_s1] ss:$12 sps:$4 sm:$0xff] (!%p223_p2)   ;;  %v888_v27 = vld [vmem:[%s1056_s1 + $0x1c] ss:$12 sps:$4 sm:$0xff] (!%p223_p2)   ;;  %v890_v28 = vld [vmem:[%s1056_s1 + $0x18] ss:$12 sps:$4 sm:$0xff] (!%p223_p2)  }
   0x9   : > { %v638_v61 = vld [vmem:[%s1058_s3] sm:$0xff] (!%p223_p2)  ;;  %v641_v63 = vld [vmem:[%s1058_s3 + $0x18] sm:$0xff] (!%p223_p2)  ;;  %v667_v0 = vld [vmem:[%s1059_s4 + $0x8] sm:$0xff] (!%p223_p2) }
   0xa   : > { %v639_v1 = vld [vmem:[%s1058_s3 + $0x8] sm:$0xff] (!%p223_p2)  ;;  %v666_v2 = vld [vmem:[%s1059_s4] sm:$0xff] (!%p223_p2) }
   0xc   : > { %328 = vperm.xlu0 (!%p223_p2), %863, %v318_v5   ;;  %338 = vperm.xlu1 (!%p223_p2), %864, %v320_v6  }
   0xd   : > { %s1063_s22 = smov (!%p257_p3, %s773_s22), 1 }
   0xe   : > { %s853_s27 = smul.u32 144, %s1063_s22  ;;  %s811_s17 = sshll.u32 %s1063_s22, 5 }
   0xf   : > { %s266_s20 = scalar_lea.vmem %s1060_s5, %s811_s17  ;;  %s271_s25 = scalar_lea.vmem %s1061_s6, %s811_s17 }
  0x10   : > { %s970_s10 = scalar_lea.vmem %s1055_s0, %s853_s27 }
  0x11   : > { %v865_v7 = vld [vmem:[%s970_s10 + $0x40] sm:$0xff]   ;;  %v867_v9 = vld [vmem:[%s970_s10 + $0x48] sm:$0xff]   ;;  %v869_v11 = vld [vmem:[%s970_s10 + $0x50] sm:$0xff]  }
  0x12   : > { %v866_v8 = vld [vmem:[%s970_s10] sm:$0xff]   ;;  %813 = vmatprep.subr.bf16.mxu0 %v865_v7  ;;  %v868_v10 = vld [vmem:[%s970_s10 + $0x8] sm:$0xff]   ;;  %v870_v12 = vld [vmem:[%s970_s10 + $0x10] sm:$0xff]  }
  0x13   : > { %814 = vmatpush3.bf16.msra.mxu0 %v866_v8  ;;  %v871_v13 = vld [vmem:[%s970_s10 + $0x58] sm:$0xff]   ;;  %v873_v15 = vld [vmem:[%s970_s10 + $0x60] sm:$0xff]   ;;  %v875_v18 = vld [vmem:[%s970_s10 + $0x68] sm:$0xff]  }
  0x14   : > { %815 = vmatprep.subr.bf16.mxu0 %v867_v9  ;;  %v872_v14 = vld [vmem:[%s970_s10 + $0x18] sm:$0xff]   ;;  %v874_v16 = vld [vmem:[%s970_s10 + $0x20] sm:$0xff]   ;;  %v885_v19 = vld [vmem:[%s970_s10 + $0x88] sm:$0xff]  }
  0x15   : > { %v880_v17 = vld [vmem:[%s970_s10 + $0x80] sm:$0xff]   ;;  %v876_v20 = vld [vmem:[%s970_s10 + $0x28] sm:$0xff]   ;;  %v877_v21 = vld [vmem:[%s970_s10 + $0x70] sm:$0xff]  }
  0x16   : > { %845 = vmatprep.subr.bf16.mxu1 %v880_v17  ;;  %v878_v23 = vld [vmem:[%s970_s10 + $0x30] sm:$0xff]   ;;  %v879_v24 = vld [vmem:[%s970_s10 + $0x78] sm:$0xff]  }
  0x17   : > { %816 = vmatpush3.bf16.msra.mxu0 %v868_v10  ;;  %846 = vmatpush3.bf16.msra.mxu1 %v880_v17  ;;  %v881_v25 = vld [vmem:[%s970_s10 + $0x38] sm:$0xff]  }
  0x18   : > { %817 = vmatprep.subr.bf16.mxu0 %v869_v11  ;;  %847 = vmatprep.subr.bf16.mxu1 %v885_v19 }
  0x1b   : > { %818 = vmatpush3.bf16.msra.mxu0 %v870_v12  ;;  %848 = vmatpush3.bf16.msra.mxu1 %v885_v19 }
  0x1c   : > { %819 = vmatprep.subr.bf16.mxu0 %v871_v13 }
  0x1e   : > { %850 = vmatmul.mubr.msk.bf16.vlgmr.msra.gmra.mrb[0].mxu1 %vm479_vm0, %v887_v22 }
  0x1f   : > { %820 = vmatpush3.bf16.msra.mxu0 %v872_v14 }
  0x20   : > { %821 = vmatprep.subr.bf16.mxu0 %v873_v15 }
  0x23   : > { %822 = vmatpush3.bf16.msra.mxu0 %v874_v16 }
  0x24   : > { %823 = vmatprep.subr.bf16.mxu0 %v875_v18 }
  0x27   : > { %824 = vmatpush3.bf16.msra.mxu0 %v876_v20 }
  0x28   : > { %825 = vmatprep.subr.bf16.mxu0 %v877_v21 }
  0x2b   : > { %826 = vmatpush3.bf16.msra.mxu0 %v878_v23  ;;  %v669_v23 = vld [vmem:[%s1059_s4 + $0x18] sm:$0xff] }
  0x2c   : > { %827 = vmatprep.subr.bf16.mxu0 %v879_v24  ;;  %v668_v24 = vld [vmem:[%s1059_s4 + $0x10] sm:$0xff] }
  0x2f   : > { %828 = vmatpush3.bf16.msra.mxu0 %v881_v25 }
  0x32   : > { %519 = vmatmul.mubr.bf16.vlgmr.msra.gmra.mrb[0].mxu0 %v882_v26 }
  0x33   : > { %526 = vmatprep.mubr.bf16.mxu0 %v888_v27 }
  0x3a   : > { %527 = vmatmul.mubr.bf16.gmra.mrb[4].mxu0 %v890_v28 }
  0x87   : > { %v324_v33 = vpop.permute.xlu0 %323  ;;  %v334_v44 = vpop.permute.xlu1 %333 }
  0x8b   : > { %v329_v39 = vpop.permute.xlu0 %328  ;;  %v339_v55 = vpop.permute.xlu1 %338 }
  0xf1   : > { %v851_v29 = vpop.f32.mrb[0].mxu1 }
  0xf2   : > { %v569_v30 = vpop.f32.mrb[1].mxu1 }
  0xf3   : > { %v852_v31 = vpop.f32.mrb[2].mxu1 }
  0xf4   : > { %v572_v32 = vpop.f32.mrb[3].mxu1 }
 0x105   : > { %v829_v34 = vpop.f32.mrb[0].mxu0 }
 0x106   : > { %v830_v35 = vpop.f32.mrb[1].mxu0 }
 0x107   : > { %v831_v36 = vadd.f32 %v830_v35, %v829_v34  ;;  %v832_v37 = vpop.f32.mrb[2].mxu0 }
 0x108   : > { %v833_v38 = vpop.f32.mrb[3].mxu0 }
 0x109   : > { %v834_v40 = vadd.f32 %v833_v38, %v832_v37  ;;  %v521_v41 = vadd.f32 %v831_v36, %v324_v33 }
 0x10b   : > { %v524_v42 = vadd.f32 %v834_v40, %v329_v39  ;;  %v570_v43 = vadd.f32 %v569_v30, %v521_v41 }
 0x10d   : > { %v573_v45 = vadd.f32 %v572_v32, %v524_v42  ;;  %v835_v46 = vpop.f32.mrb[4].mxu0  ;;  %v585_v47 = vsel %vm584_vm1, %v570_v43, 0.0 }
 0x10e   : > { %v836_v48 = vpop.f32.mrb[5].mxu0  ;;  %586 = vadd.xlane.f32.xlu0 %v585_v47 }
 0x10f   : > { %v837_v49 = vadd.f32 %v836_v48, %v835_v46  ;;  %v838_v50 = vpop.f32.mrb[6].mxu0  ;;  %v588_v51 = vsel %vm584_vm1, %v573_v45, 0.0  ;;  %v694_v48 = vld [vmem:[%s266_s20] sm:$0xff] }
 0x110   : > { %v839_v52 = vpop.f32.mrb[7].mxu0  ;;  %589 = vadd.xlane.f32.xlu1 %v588_v51  ;;  %v695_v51 = vld [vmem:[%s266_s20 + $0x8] sm:$0xff] }
 0x111   : > { %v529_v53 = vadd.f32 %v837_v49, %v334_v44  ;;  %v840_v54 = vadd.f32 %v839_v52, %v838_v50 }
 0x113   : > { %v532_v56 = vadd.f32 %v840_v54, %v339_v55  ;;  %v578_v57 = vadd.f32 %v851_v29, %v529_v53 }
 0x115   : > { %v591_v58 = vsel %vm584_vm1, %v578_v57, 0.0  ;;  %v581_v59 = vadd.f32 %v852_v31, %v532_v56 }
 0x116   : > { %592 = vadd.xlane.f32.xlu0 %v591_v58 }
 0x117   : > { %v594_v60 = vsel %vm584_vm1, %v581_v59, 0.0 }
 0x11a   : > { %595 = vadd.xlane.f32.xlu0 %v594_v60 }
 0x121   : > { %644 = vperm.xlu1 %864, %v638_v61  }
 0x125   : > { %654 = vperm.xlu1 %864, %v640_v62  }
 0x129   : > { %659 = vperm.xlu1 %864, %v641_v63  }
 0x12d   : > { %677 = vperm.xlu1 %864, %v667_v0  }
 0x130   : > { %649 = vperm.xlu0 %863, %v639_v1  }
 0x134   : > { %672 = vperm.xlu0 %863, %v666_v2   ;;  %v697_v2 = vld [vmem:[%s266_s20 + $0x18] sm:$0xff] }
 0x19b   : > { %v587_v3 = vpop.xlane.xlu0 %586 }
 0x19c   : > { %v598_v4 = vmul.f32 0.0625, %v587_v3 }
 0x19d   : > { %v590_v5 = vpop.xlane.xlu1 %589 }
 0x19e   : > { %v602_v6 = vsub.f32 %v570_v43, %v598_v4  ;;  %v599_v7 = vmul.f32 0.0625, %v590_v5 }
 0x1a0   : > { %v603_v8 = vsub.f32 %v573_v45, %v599_v7  ;;  %v606_v9 = vmul.f32 %v602_v6, %v602_v6 }
 0x1a1   : > { %v645_v25 = vpop.permute.xlu1 %644 }
 0x1a2   : > { %v610_v10 = vsel %vm584_vm1, %v606_v9, 0.0  ;;  %v607_v11 = vmul.f32 %v603_v8, %v603_v8 }
 0x1a3   : > { %611 = vadd.xlane.f32.xlu1 %v610_v10  ;;  %v593_v12 = vpop.xlane.xlu0 %592 }
 0x1a4   : > { %v600_v13 = vmul.f32 0.0625, %v593_v12  ;;  %v613_v14 = vsel %vm584_vm1, %v607_v11, 0.0 }
 0x1a5   : > { %614 = vadd.xlane.f32.xlu0 %v613_v14  ;;  %v655_v26 = vpop.permute.xlu1 %654 }
 0x1a6   : > { %v604_v15 = vsub.f32 %v578_v57, %v600_v13 }
 0x1a7   : > { %v596_v16 = vpop.xlane.xlu0 %595 }
 0x1a8   : > { %v601_v17 = vmul.f32 0.0625, %v596_v16  ;;  %v608_v18 = vmul.f32 %v604_v15, %v604_v15 }
 0x1a9   : > { %v660_v27 = vpop.permute.xlu1 %659 }
 0x1aa   : > { %v605_v19 = vsub.f32 %v581_v59, %v601_v17  ;;  %v616_v20 = vsel %vm584_vm1, %v608_v18, 0.0  ;;  %v696_v59 = vld [vmem:[%s266_s20 + $0x10] sm:$0xff] }
 0x1ab   : > { %617 = vadd.xlane.f32.xlu1 %v616_v20 }
 0x1ac   : > { %v609_v21 = vmul.f32 %v605_v19, %v605_v19 }
 0x1ad   : > { %v678_v29 = vpop.permute.xlu1 %677 }
 0x1ae   : > { %v619_v22 = vsel %vm584_vm1, %v609_v21, 0.0 }
 0x1af   : > { %620 = vadd.xlane.f32.xlu0 %v619_v22  ;;  %v650_v28 = vpop.permute.xlu0 %649 }
 0x1b3   : > { %v673_v30 = vpop.permute.xlu0 %672 }
 0x1bc   : > { %687 = vperm.xlu1 %864, %v669_v23  }
 0x1c5   : > { %682 = vperm.xlu0 %863, %v668_v24  }
 0x230   : > { %v612_v31 = vpop.xlane.xlu1 %611 }
 0x231   : > { %v622_v32 = vmul.f32 0.0625, %v612_v31 }
 0x232   : > { %v615_v33 = vpop.xlane.xlu0 %614 }
 0x233   : > { %v626_v34 = vadd.f32 1e-05, %v622_v32  ;;  %v623_v35 = vmul.f32 0.0625, %v615_v33 }
 0x235   : > { %891 = vrsqrt.f32 %v626_v34  ;;  %v627_v36 = vadd.f32 1e-05, %v623_v35 }
 0x237   : > { %893 = vrsqrt.f32 %v627_v36 }
 0x238   : > { %v618_v37 = vpop.xlane.xlu1 %617 }
 0x239   : > { %v624_v38 = vmul.f32 0.0625, %v618_v37 }
 0x23b   : > { %v628_v39 = vadd.f32 1e-05, %v624_v38 }
 0x23c   : > { %v621_v40 = vpop.xlane.xlu0 %620  ;;  %v688_v1 = vpop.permute.xlu1 %687 }
 0x23d   : > { %895 = vrsqrt.f32 %v628_v39  ;;  %v625_v41 = vmul.f32 0.0625, %v621_v40 }
 0x23f   : > { %v892_v42 = vpop.eup %891  ;;  %v629_v43 = vadd.f32 1e-05, %v625_v41 }
 0x240   : > { %v634_v44 = vmul.f32 %v892_v42, %v602_v6 }
 0x241   : > { %v894_v45 = vpop.eup %893  ;;  %897 = vrsqrt.f32 %v629_v43 }
 0x242   : > { %v662_v46 = vmul.f32 %v645_v25, %v634_v44  ;;  %v635_v47 = vmul.f32 %v894_v45, %v603_v8 }
 0x244   : > { %v663_v49 = vmul.f32 %v650_v28, %v635_v47  ;;  %v690_v50 = vadd.f32 %v673_v30, %v662_v46  ;;  %v683_v60 = vpop.permute.xlu0 %682 }
 0x246   : > { %v691_v52 = vadd.f32 %v678_v29, %v663_v49  ;;  %v698_v53 = vadd.f32 %v694_v48, %v690_v50 }
 0x247   : > { %v896_v54 = vpop.eup %895 }
 0x248   : > { %v636_v55 = vmul.f32 %v896_v54, %v604_v15  ;;  %v699_v56 = vadd.f32 %v695_v51, %v691_v52  ;;  %702 = vst.msk [vmem:[%s271_s25] sm:$0xff] %vm584_vm1, %v698_v53 }
 0x24a   : > { %v664_v57 = vmul.f32 %v655_v26, %v636_v55  ;;  %703 = vst.msk [vmem:[%s271_s25 + $0x8] sm:$0xff] %vm584_vm1, %v699_v56 }
 0x24b   : > { %v898_v58 = vpop.eup %897 }
 0x24c   : > { %v637_v61 = vmul.f32 %v898_v58, %v605_v19  ;;  %v692_v62 = vadd.f32 %v683_v60, %v664_v57 }
 0x24e   : > { %v665_v63 = vmul.f32 %v660_v27, %v637_v61  ;;  %v700_v0 = vadd.f32 %v696_v59, %v692_v62 }
 0x250   : > { %v693_v3 = vadd.f32 %v688_v1, %v665_v63  ;;  %704 = vst.msk [vmem:[%s271_s25 + $0x10] sm:$0xff] %vm584_vm1, %v700_v0 }
 0x252   : > { %v701_v4 = vadd.f32 %v697_v2, %v693_v3 }
 0x254   : > { %705 = vst.msk [vmem:[%s271_s25 + $0x18] sm:$0xff] %vm584_vm1, %v701_v4 }
 0x255 PF: > { %s16_s21 = sadd.s32 1, %s905_s21  }
 0x256   : > { %p13_p4 = scmp.ge.s32.totalorder %s16_s21, 4  }
 0x258   :  { %15 = sbr.rel (!%p13_p4) target bundleno = 1 (0x1), region = 77 }

// kernel: r_recon_forward.17
= control target key start
LH: loop header
LB: loop body
LE: loop exit
PB: predicated region body
PF: predicated region fallthrough
CT: control target
= control target key end

     0   :  { %s749_s18 = smov 0   ;;  %s823_s0 = inlined_call_operand.vmem [shape: bf16[2,288,64], index: 0, kind: input, shape index: {}]   ;;  %s824_s1 = inlined_call_operand.vmem [shape: bf16[16,288], index: 1, kind: input, shape index: {}]   ;;  %s825_s2 = inlined_call_operand.vmem [shape: f32[16,1], index: 2, kind: input, shape index: {}]   ;;  %s826_s3 = inlined_call_operand.vmem [shape: f32[16,1], index: 3, kind: input, shape index: {}]   ;;  %s827_s4 = inlined_call_operand.vmem [shape: f32[16,1], index: 4, kind: input, shape index: {}]   ;;  %s828_s5 = inlined_call_operand.vmem [shape: f32[2,16,64], index: 5, kind: output, shape index: {}]  }
   0x1 LB: > { %s602_s19 = sadd.s32 4294967295, %s714_s18   ;;  %p606_p0 = scmp.ge.s32.totalorder %s714_s18, 1  ;;  %s714_s18 = sphi %s749_s18, %s15_s18  }
   0x2   : > { %p187_p1 = scmp.lt.s32.totalorder %s714_s18, 3 }
   0x4   : > { %p188_p2 = pnand %p606_p0, %p187_p1 }
   0x5   : > { %p215_p3 = scmp.lt.s32.totalorder (!%p188_p2), %s602_s19, 1  ;;  %v716_v0 = vmov (!%p188_p2), 0.0   ;;  %v701_v1 = vld [vmem:[%s824_s1 + $0x4] ss:$12 sps:$4 sm:$0xff] (!%p188_p2)   ;;  %vm717_vm0 = vmmov (!%p188_p2), 0   ;;  %v718_v2 = vmov (!%p188_p2), 0  }
   0x6   : > { %191 = sbr.rel (%p188_p2) target bundleno = 589 (0x24d), region = 40  ;;  %660 = vmatprep.subr.bf16.mxu1 (!%p188_p2), %v716_v0  ;;  %664 = vmatprep.mubr.msk.bf16.mxu1 (!%p188_p2), %vm717_vm0, %v716_v0  ;;  %v266_v3 = vld [vmem:[%s825_s2] sm:$0xff] (!%p188_p2)  ;;  %v267_v4 = vld [vmem:[%s825_s2 + $0x8] sm:$0xff] (!%p188_p2)  ;;  %vm401_vm1 = vcmask (!%p188_p2), 261120   ;;  %vm487_vm2 = vcmask (!%p188_p2), 523264  }
   0x7   : > { %437 = vmatprep.mubr.bf16.mxu0 (!%p188_p2), %v701_v1  ;;  %680 = vset.pattern.permute.xlu0 (!%p188_p2), %v718_v2  ;;  %v703_v19 = vld [vmem:[%s824_s1 + $0x8] ss:$12 sps:$4 sm:$0xff] (!%p188_p2)   ;;  %v699_v24 = vld [vmem:[%s824_s1] ss:$12 sps:$4 sm:$0xff] (!%p188_p2)  }
   0x8   : > { %270 = vperm.xlu0 (!%p188_p2), %680, %v266_v3   ;;  %681 = vset.pattern.permute.xlu1 (!%p188_p2), %v718_v2  ;;  %v515_v43 = vld [vmem:[%s826_s3] sm:$0xff] (!%p188_p2)  ;;  %v516_v44 = vld [vmem:[%s826_s3 + $0x8] sm:$0xff] (!%p188_p2) }
   0x9   : > { %v529_v45 = vld [vmem:[%s827_s4] sm:$0xff] (!%p188_p2)  ;;  %v530_v56 = vld [vmem:[%s827_s4 + $0x8] sm:$0xff] (!%p188_p2) }
   0xc   : > { %275 = vperm.xlu0 (!%p188_p2), %680, %v267_v4  }
   0xd   : > { %s830_s19 = smov (!%p215_p3, %s602_s19), 1 }
   0xe   : > { %s668_s24 = smul.u32 144, %s830_s19  ;;  %s634_s17 = sshll.u32 %s830_s19, 4 }
   0xf   : > { %s224_s22 = scalar_lea.vmem %s828_s5, %s634_s17 }
  0x10   : > { %s772_s29 = scalar_lea.vmem %s823_s0, %s668_s24 }
  0x11   : > { %v682_v5 = vld [vmem:[%s772_s29 + $0x40] sm:$0xff]   ;;  %v684_v7 = vld [vmem:[%s772_s29 + $0x48] sm:$0xff]   ;;  %v686_v9 = vld [vmem:[%s772_s29 + $0x50] sm:$0xff]  }
  0x12   : > { %v683_v6 = vld [vmem:[%s772_s29] sm:$0xff]   ;;  %635 = vmatprep.subr.bf16.mxu0 %v682_v5  ;;  %v685_v8 = vld [vmem:[%s772_s29 + $0x8] sm:$0xff]   ;;  %v687_v10 = vld [vmem:[%s772_s29 + $0x10] sm:$0xff]  }
  0x13   : > { %636 = vmatpush3.bf16.msra.mxu0 %v683_v6  ;;  %v688_v11 = vld [vmem:[%s772_s29 + $0x58] sm:$0xff]   ;;  %v690_v13 = vld [vmem:[%s772_s29 + $0x60] sm:$0xff]   ;;  %v692_v16 = vld [vmem:[%s772_s29 + $0x68] sm:$0xff]  }
  0x14   : > { %637 = vmatprep.subr.bf16.mxu0 %v684_v7  ;;  %v689_v12 = vld [vmem:[%s772_s29 + $0x18] sm:$0xff]   ;;  %v696_v14 = vld [vmem:[%s772_s29 + $0x80] sm:$0xff]   ;;  %v702_v17 = vld [vmem:[%s772_s29 + $0x88] sm:$0xff]  }
  0x15   : > { %v691_v15 = vld [vmem:[%s772_s29 + $0x20] sm:$0xff]   ;;  %661 = vmatpush3.bf16.msra.mxu1 %v696_v14  ;;  %v693_v18 = vld [vmem:[%s772_s29 + $0x28] sm:$0xff]   ;;  %v694_v20 = vld [vmem:[%s772_s29 + $0x70] sm:$0xff]  }
  0x16   : > { %662 = vmatprep.subr.bf16.mxu1 %v716_v0  ;;  %v695_v21 = vld [vmem:[%s772_s29 + $0x30] sm:$0xff]   ;;  %v697_v22 = vld [vmem:[%s772_s29 + $0x78] sm:$0xff]  }
  0x17   : > { %638 = vmatpush3.bf16.msra.mxu0 %v685_v8  ;;  %v698_v23 = vld [vmem:[%s772_s29 + $0x38] sm:$0xff]  }
  0x18   : > { %639 = vmatprep.subr.bf16.mxu0 %v686_v9 }
  0x19   : > { %663 = vmatpush3.bf16.msra.mxu1 %v702_v17 }
  0x1b   : > { %640 = vmatpush3.bf16.msra.mxu0 %v687_v10 }
  0x1c   : > { %641 = vmatprep.subr.bf16.mxu0 %v688_v11  ;;  %665 = vmatmul.mubr.msk.bf16.vlgmr.msra.gmra.mrb[0].mxu1 %vm401_vm1, %v703_v19 }
  0x1f   : > { %642 = vmatpush3.bf16.msra.mxu0 %v689_v12 }
  0x20   : > { %643 = vmatprep.subr.bf16.mxu0 %v690_v13 }
  0x23   : > { %644 = vmatpush3.bf16.msra.mxu0 %v691_v15 }
  0x24   : > { %645 = vmatprep.subr.bf16.mxu0 %v692_v16 }
  0x27   : > { %646 = vmatpush3.bf16.msra.mxu0 %v693_v18 }
  0x28   : > { %647 = vmatprep.subr.bf16.mxu0 %v694_v20 }
  0x2b   : > { %648 = vmatpush3.bf16.msra.mxu0 %v695_v21 }
  0x2c   : > { %649 = vmatprep.subr.bf16.mxu0 %v697_v22 }
  0x2f   : > { %650 = vmatpush3.bf16.msra.mxu0 %v698_v23 }
  0x32   : > { %438 = vmatmul.mubr.bf16.vlgmr.msra.gmra.mrb[0].mxu0 %v699_v24 }
  0x87   : > { %v271_v29 = vpop.permute.xlu0 %270 }
  0x8b   : > { %v276_v37 = vpop.permute.xlu0 %275 }
  0xef   : > { %v480_v25 = vpop.f32.mrb[0].mxu1 }
  0xf0   : > { %v666_v26 = vpop.f32.mrb[1].mxu1 }
  0xf1   : > { %v483_v27 = vpop.f32.mrb[2].mxu1 }
  0xf2   : > { %v667_v28 = vpop.f32.mrb[3].mxu1 }
 0x105   : > { %v651_v30 = vpop.f32.mrb[0].mxu0 }
 0x106   : > { %v652_v31 = vpop.f32.mrb[1].mxu0 }
 0x107   : > { %v653_v32 = vadd.f32 %v652_v31, %v651_v30  ;;  %v654_v33 = vpop.f32.mrb[2].mxu0 }
 0x108   : > { %v655_v34 = vpop.f32.mrb[3].mxu0 }
 0x109   : > { %v440_v35 = vadd.f32 %v653_v32, %v271_v29  ;;  %v656_v36 = vadd.f32 %v655_v34, %v654_v33 }
 0x10b   : > { %v481_v38 = vadd.f32 %v480_v25, %v440_v35  ;;  %v443_v39 = vadd.f32 %v656_v36, %v276_v37 }
 0x10d   : > { %v484_v40 = vadd.f32 %v483_v27, %v443_v39  ;;  %v488_v41 = vsel %vm487_vm2, %v481_v38, 0.0 }
 0x10e   : > { %489 = vadd.xlane.f32.xlu1 %v488_v41 }
 0x10f   : > { %v491_v42 = vsel %vm487_vm2, %v484_v40, 0.0 }
 0x112   : > { %492 = vadd.xlane.f32.xlu1 %v491_v42 }
 0x123   : > { %519 = vperm.xlu1 %681, %v515_v43  }
 0x127   : > { %524 = vperm.xlu1 %681, %v516_v44  }
 0x12b   : > { %533 = vperm.xlu1 %681, %v529_v45  }
 0x19b   : > { %v490_v46 = vpop.xlane.xlu1 %489 }
 0x19c   : > { %v495_v47 = vmul.f32 0.015625, %v490_v46 }
 0x19e   : > { %v497_v48 = vsub.f32 %v481_v38, %v495_v47 }
 0x19f   : > { %v493_v49 = vpop.xlane.xlu1 %492 }
 0x1a0   : > { %v496_v50 = vmul.f32 0.015625, %v493_v49  ;;  %v499_v51 = vmul.f32 %v497_v48, %v497_v48 }
 0x1a2   : > { %v498_v52 = vsub.f32 %v484_v40, %v496_v50  ;;  %v501_v53 = vsel %vm487_vm2, %v499_v51, 0.0 }
 0x1a3   : > { %502 = vadd.xlane.f32.xlu0 %v501_v53  ;;  %v520_v57 = vpop.permute.xlu1 %519 }
 0x1a4   : > { %v500_v54 = vmul.f32 %v498_v52, %v498_v52 }
 0x1a6   : > { %v504_v55 = vsel %vm487_vm2, %v500_v54, 0.0 }
 0x1a7   : > { %505 = vadd.xlane.f32.xlu1 %v504_v55  ;;  %v525_v58 = vpop.permute.xlu1 %524 }
 0x1ab   : > { %v534_v59 = vpop.permute.xlu1 %533 }
 0x1b8   : > { %538 = vperm.xlu1 %681, %v530_v56  }
 0x230   : > { %v503_v60 = vpop.xlane.xlu0 %502 }
 0x231   : > { %v507_v61 = vmul.f32 0.015625, %v503_v60 }
 0x233   : > { %v509_v62 = vadd.f32 1e-05, %v507_v61 }
 0x234   : > { %v506_v63 = vpop.xlane.xlu1 %505 }
 0x235   : > { %704 = vrsqrt.f32 %v509_v62  ;;  %v508_v0 = vmul.f32 0.015625, %v506_v63 }
 0x237   : > { %v510_v1 = vadd.f32 1e-05, %v508_v0 }
 0x238   : > { %v539_v10 = vpop.permute.xlu1 %538 }
 0x239   : > { %706 = vrsqrt.f32 %v510_v1 }
 0x23f   : > { %v705_v2 = vpop.eup %704 }
 0x240   : > { %v513_v3 = vmul.f32 %v705_v2, %v497_v48 }
 0x242   : > { %v527_v4 = vmul.f32 %v520_v57, %v513_v3 }
 0x243   : > { %v707_v5 = vpop.eup %706 }
 0x244   : > { %v514_v6 = vmul.f32 %v707_v5, %v498_v52  ;;  %v541_v7 = vadd.f32 %v534_v59, %v527_v4 }
 0x246   : > { %v528_v8 = vmul.f32 %v525_v58, %v514_v6  ;;  %v543_v9 = vmax.f32 %v541_v7, 0.0 }
 0x248   : > { %545 = vst.msk [vmem:[%s224_s22] sm:$0xff] %vm487_vm2, %v543_v9  ;;  %v542_v11 = vadd.f32 %v539_v10, %v528_v8 }
 0x24a   : > { %v544_v12 = vmax.f32 %v542_v11, 0.0 }
 0x24c   : > { %546 = vst.msk [vmem:[%s224_s22 + $0x8] sm:$0xff] %vm487_vm2, %v544_v12 }
 0x24d PF: > { %s15_s18 = sadd.s32 1, %s714_s18  }
 0x24e   : > { %p12_p4 = scmp.ge.s32.totalorder %s15_s18, 4  }
 0x250   :  { %14 = sbr.rel (!%p12_p4) target bundleno = 1 (0x1), region = 70 }

// kernel: r_recon_forward.18
= control target key start
LH: loop header
LB: loop body
LE: loop exit
PB: predicated region body
PF: predicated region fallthrough
CT: control target
= control target key end

     0   :  { %s598_s18 = smov 0   ;;  %s651_s0 = inlined_call_operand.vmem [shape: bf16[2,144,256], index: 0, kind: input, shape index: {}]   ;;  %s652_s1 = inlined_call_operand.vmem [shape: bf16[8,144], index: 1, kind: input, shape index: {}]   ;;  %s653_s2 = inlined_call_operand.vmem [shape: f32[8,1], index: 2, kind: input, shape index: {}]   ;;  %s654_s3 = inlined_call_operand.vmem [shape: f32[8,1], index: 3, kind: input, shape index: {}]   ;;  %s655_s4 = inlined_call_operand.vmem [shape: f32[8,1], index: 4, kind: input, shape index: {}]   ;;  %s656_s5 = inlined_call_operand.vmem [shape: f32[2,8,256], index: 5, kind: output, shape index: {}]  }
   0x1 LB: > { %s484_s19 = sadd.s32 4294967295, %s565_s18   ;;  %p488_p0 = scmp.ge.s32.totalorder %s565_s18, 1  ;;  %s565_s18 = sphi %s598_s18, %s15_s18  }
   0x2   : > { %p187_p1 = scmp.lt.s32.totalorder %s565_s18, 3 }
   0x4   : > { %p188_p2 = pnand %p488_p0, %p187_p1 }
   0x5   : > { %p215_p3 = scmp.lt.s32.totalorder (!%p188_p2), %s484_s19, 1  ;;  %v226_v0 = vld [vmem:[%s652_s1] sm:$0xff] (!%p188_p2)  ;;  %vm347_vm0 = vcmask (!%p188_p2), 130048   ;;  %v567_v3 = vmov (!%p188_p2), 0  }
   0x6   : > { %191 = sbr.rel (%p188_p2) target bundleno = 587 (0x24b), region = 40  ;;  %v245_v1 = vld [vmem:[%s653_s2] sm:$0xff] (!%p188_p2)  ;;  %v493_v2 = vcombine.high (!%p188_p2), %v226_v0, %v226_v0  ;;  %526 = vset.pattern.permute.xlu0 (!%p188_p2), %v567_v3  ;;  %527 = vset.pattern.permute.xlu1 (!%p188_p2), %v567_v3  ;;  %v492_v22 = vcombine.low (!%p188_p2), %v226_v0, %v226_v0 }
   0x7   : > { %248 = vperm.xlu0 (!%p188_p2), %526, %v245_v1   ;;  %v409_v23 = vld [vmem:[%s654_s3] sm:$0xff] (!%p188_p2) }
   0x8   : > { %512 = vmatprep.mubr.msk.bf16.mxu0 (!%p188_p2), %vm347_vm0, %v493_v2  ;;  %412 = vperm.xlu1 (!%p188_p2), %527, %v409_v23   ;;  %v417_v39 = vld [vmem:[%s655_s4] sm:$0xff] (!%p188_p2) }
   0xd   : > { %s658_s19 = smov (!%p215_p3, %s484_s19), 1 }
   0xe   : > { %s516_s24 = smul.u32 144, %s658_s19  ;;  %s515_s7 = sshll.u32 %s658_s19, 4 }
   0xf   : > { %s224_s10 = scalar_lea.vmem %s656_s5, %s515_s7 }
  0x10   : > { %s618_s27 = scalar_lea.vmem %s651_s0, %s516_s24 }
  0x11   : > { %v528_v4 = vld [vmem:[%s618_s27 + $0x4] ss:$8 sps:$4 sm:$0xff]   ;;  %v530_v5 = vld [vmem:[%s618_s27] ss:$8 sps:$4 sm:$0xff]   ;;  %v531_v6 = vld [vmem:[%s618_s27 + $0x14] ss:$8 sps:$4 sm:$0xff]  }
  0x12   : > { %351 = vmatprep.subr.bf16.mxu0 %v528_v4  ;;  %v533_v7 = vld [vmem:[%s618_s27 + $0x10] ss:$8 sps:$4 sm:$0xff]   ;;  %v534_v8 = vld [vmem:[%s618_s27 + $0x24] ss:$8 sps:$4 sm:$0xff]   ;;  %v536_v9 = vld [vmem:[%s618_s27 + $0x20] ss:$8 sps:$4 sm:$0xff]  }
  0x13   : > { %352 = vmatpush1.bf16.msra.mxu0 %v530_v5  ;;  %v537_v10 = vld [vmem:[%s618_s27 + $0x34] ss:$8 sps:$4 sm:$0xff]   ;;  %v539_v11 = vld [vmem:[%s618_s27 + $0x30] ss:$8 sps:$4 sm:$0xff]   ;;  %v540_v12 = vld [vmem:[%s618_s27 + $0x44] ss:$8 sps:$4 sm:$0xff]  }
  0x14   : > { %353 = vmatprep.subr.bf16.mxu0 %v531_v6  ;;  %v542_v13 = vld [vmem:[%s618_s27 + $0x40] ss:$8 sps:$4 sm:$0xff]   ;;  %v543_v14 = vld [vmem:[%s618_s27 + $0x54] ss:$8 sps:$4 sm:$0xff]   ;;  %v545_v15 = vld [vmem:[%s618_s27 + $0x50] ss:$8 sps:$4 sm:$0xff]  }
  0x15   : > { %v546_v16 = vld [vmem:[%s618_s27 + $0x64] ss:$8 sps:$4 sm:$0xff]   ;;  %v548_v17 = vld [vmem:[%s618_s27 + $0x60] ss:$8 sps:$4 sm:$0xff]   ;;  %v549_v18 = vld [vmem:[%s618_s27 + $0x74] ss:$8 sps:$4 sm:$0xff]  }
  0x16   : > { %v551_v19 = vld [vmem:[%s618_s27 + $0x70] ss:$8 sps:$4 sm:$0xff]   ;;  %v552_v20 = vld [vmem:[%s618_s27 + $0x84] ss:$8 sps:$4 sm:$0xff]   ;;  %v554_v21 = vld [vmem:[%s618_s27 + $0x80] ss:$8 sps:$4 sm:$0xff]  }
  0x17   : > { %354 = vmatpush1.bf16.msra.mxu0 %v533_v7 }
  0x18   : > { %355 = vmatprep.subr.bf16.mxu0 %v534_v8 }
  0x1b   : > { %356 = vmatpush1.bf16.msra.mxu0 %v536_v9 }
  0x1c   : > { %357 = vmatprep.subr.bf16.mxu0 %v537_v10 }
  0x1f   : > { %358 = vmatpush1.bf16.msra.mxu0 %v539_v11 }
  0x20   : > { %359 = vmatprep.subr.bf16.mxu0 %v540_v12 }
  0x23   : > { %360 = vmatpush1.bf16.msra.mxu0 %v542_v13 }
  0x24   : > { %361 = vmatprep.subr.bf16.mxu0 %v543_v14 }
  0x27   : > { %362 = vmatpush1.bf16.msra.mxu0 %v545_v15 }
  0x28   : > { %363 = vmatprep.subr.bf16.mxu0 %v546_v16 }
  0x2b   : > { %364 = vmatpush1.bf16.msra.mxu0 %v548_v17 }
  0x2c   : > { %365 = vmatprep.subr.bf16.mxu0 %v549_v18 }
  0x2f   : > { %366 = vmatpush1.bf16.msra.mxu0 %v551_v19 }
  0x30   : > { %367 = vmatprep.subr.bf16.mxu0 %v552_v20 }
  0x33   : > { %368 = vmatpush1.bf16.msra.mxu0 %v554_v21 }
  0x36   : > { %384 = vmatmul.mubr.bf16.vlgmr.msra.gmra.mrb[0].mxu0 %v492_v22 }
  0x86   : > { %v249_v24 = vpop.permute.xlu0 %248 }
  0x87   : > { %v413_v40 = vpop.permute.xlu1 %412 }
 0x109   : > { %v385_v25 = vpop.f32.mrb[0].mxu0 }
 0x10a   : > { %v386_v26 = vadd.f32 %v385_v25, %v249_v24  ;;  %v387_v27 = vpop.f32.mrb[1].mxu0 }
 0x10b   : > { %v388_v28 = vadd.f32 %v387_v27, %v249_v24  ;;  %v389_v29 = vpop.f32.mrb[2].mxu0 }
 0x10c   : > { %v390_v30 = vpop.f32.mrb[3].mxu0 }
 0x10d   : > { %v392_v31 = vadd.f32 %v388_v28, %v386_v26 }
 0x10f   : > { %393 = vadd.xlane.f32.xlu0 %v392_v31 }
 0x19c   : > { %v394_v32 = vpop.xlane.xlu0 %393 }
 0x19d   : > { %v396_v33 = vmul.f32 0.00390625, %v394_v32 }
 0x19f   : > { %v397_v34 = vsub.f32 %v386_v26, %v396_v33  ;;  %v398_v35 = vsub.f32 %v388_v28, %v396_v33 }
 0x1a1   : > { %v399_v36 = vmul.f32 %v397_v34, %v397_v34  ;;  %v400_v37 = vmul.f32 %v398_v35, %v398_v35 }
 0x1a3   : > { %v401_v38 = vadd.f32 %v400_v37, %v399_v36 }
 0x1a5   : > { %402 = vadd.xlane.f32.xlu1 %v401_v38 }
 0x1b6   : > { %420 = vperm.xlu1 %527, %v417_v39  }
 0x232   : > { %v403_v41 = vpop.xlane.xlu1 %402 }
 0x233   : > { %v404_v42 = vmul.f32 0.00390625, %v403_v41 }
 0x235   : > { %v405_v43 = vadd.f32 1e-05, %v404_v42 }
 0x236   : > { %v421_v49 = vpop.permute.xlu1 %420 }
 0x237   : > { %557 = vrsqrt.f32 %v405_v43 }
 0x241   : > { %v558_v44 = vpop.eup %557 }
 0x242   : > { %v407_v45 = vmul.f32 %v558_v44, %v397_v34  ;;  %v408_v46 = vmul.f32 %v558_v44, %v398_v35 }
 0x244   : > { %v415_v47 = vmul.f32 %v413_v40, %v407_v45  ;;  %v416_v48 = vmul.f32 %v413_v40, %v408_v46 }
 0x246   : > { %v423_v50 = vadd.f32 %v421_v49, %v415_v47  ;;  %v424_v51 = vadd.f32 %v421_v49, %v416_v48 }
 0x248   : > { %v425_v52 = vmax.f32 %v423_v50, 0.0  ;;  %v426_v53 = vmax.f32 %v424_v51, 0.0 }
 0x24a   : > { %427 = vst [vmem:[%s224_s10] sm:$0xff] %v425_v52  ;;  %428 = vst [vmem:[%s224_s10 + $0x8] sm:$0xff] %v426_v53 }
 0x24b PF: > { %s15_s18 = sadd.s32 1, %s565_s18  }
 0x24c   : > { %p12_p4 = scmp.ge.s32.totalorder %s15_s18, 4  }
 0x24e   :  { %14 = sbr.rel (!%p12_p4) target bundleno = 1 (0x1), region = 70 }

// kernel: r_recon_forward.19
= control target key start
LH: loop header
LB: loop body
LE: loop exit
PB: predicated region body
PF: predicated region fallthrough
CT: control target
= control target key end

     0   :  { %s901_s18 = smov 0   ;;  %s989_s0 = inlined_call_operand.vmem [shape: bf16[2,392,256], index: 0, kind: input, shape index: {}]   ;;  %s990_s1 = inlined_call_operand.vmem [shape: bf16[3,392], index: 1, kind: input, shape index: {}]   ;;  %s991_s2 = inlined_call_operand.vmem [shape: f32[3,1], index: 2, kind: input, shape index: {}]   ;;  %s992_s3 = inlined_call_operand.vmem [shape: f32[3,1], index: 3, kind: input, shape index: {}]   ;;  %s993_s4 = inlined_call_operand.vmem [shape: f32[3,1], index: 4, kind: input, shape index: {}]   ;;  %s994_s5 = inlined_call_operand.vmem [shape: f32[2,3,256], index: 5, kind: output, shape index: {}]  }
   0x1 LB: > { %s703_s19 = sadd.s32 4294967295, %s867_s18   ;;  %p707_p0 = scmp.ge.s32.totalorder %s867_s18, 1  ;;  %s867_s18 = sphi %s901_s18, %s15_s18  }
   0x2   : > { %p187_p1 = scmp.lt.s32.totalorder %s867_s18, 3 }
   0x4   : > { %p188_p2 = pnand %p707_p0, %p187_p1 }
   0x5   : > { %p215_p3 = scmp.lt.s32.totalorder (!%p188_p2), %s703_s19, 1  ;;  %v226_v0 = vld [vmem:[%s990_s1] sm:$0xff] (!%p188_p2)  ;;  %v287_v1 = vlaneseq (!%p188_p2)  ;;  %v869_v2 = vmov (!%p188_p2), 1983009808   ;;  %v870_v6 = vmov (!%p188_p2), 0   ;;  %vm548_vm0 = vcmask (!%p188_p2), 64512  }
   0x6   : > { %191 = sbr.rel (%p188_p2) target bundleno = 313 (0x139), region = 40  ;;  %v285_v3 = vunpack.c.l.s4 (!%p188_p2), %v869_v2  ;;  %v276_v4 = vld [vmem:[%s991_s2] sm:$0x7] (!%p188_p2)  ;;  %781 = vset.pattern.permute.xlu0 (!%p188_p2), %v870_v6  ;;  %v283_v7 = vcombine.high (!%p188_p2), %v226_v0, %v226_v0  ;;  %vm552_vm1 = vcmask (!%p188_p2), 1043456  }
   0x7   : > { %v288_v5 = vshrl.u32 (!%p188_p2), %v287_v1, 7  ;;  %279 = vperm.xlu0 (!%p188_p2), %781, %v276_v4  }
   0x8   : > { %v286_v8 = vunpack.c.0.s8 (!%p188_p2), %v285_v3 }
   0xa   : > { %v289_v9 = vsub.s32 (!%p188_p2), %v286_v8, %v288_v5 }
   0xc   : > { %v924_v11 = vrot.slane (!%p188_p2), %v283_v7, %v289_v9  ;;  %v926_v12 = vrot.slane (!%p188_p2), %v226_v0, %v289_v9 }
   0xd   : > { %s996_s19 = smov (!%p215_p3, %s703_s19), 1 }
   0xe   : > { %s770_s22 = smul.u32 392, %s996_s19  ;;  %v299_v15 = vcombine.high %v924_v11, %v924_v11  ;;  %v298_v16 = vcombine.high %v926_v12, %v926_v12  ;;  %s765_s26 = sshll.u32 %s996_s19, 3 }
   0xf   : > { %s224_s29 = scalar_lea.vmem %s994_s5, %s765_s26 }
  0x10   : > { %s921_s25 = scalar_lea.vmem %s989_s0, %s770_s22  ;;  %762 = vmatprep.mubr.msk.bf16.mxu0 %vm548_vm0, %v299_v15  ;;  %591 = vmatprep.mubr.bf16.mxu1 %v298_v16 }
  0x11   : > { %v782_v10 = vld [vmem:[%s921_s25 + $0x4] ss:$8 sps:$4 sm:$0xff]   ;;  %v784_v13 = vld [vmem:[%s921_s25] ss:$8 sps:$4 sm:$0xff]   ;;  %v785_v14 = vld [vmem:[%s921_s25 + $0x14] ss:$8 sps:$4 sm:$0xff]  }
  0x12   : > { %559 = vmatprep.subr.bf16.mxu1 %v782_v10  ;;  %v787_v17 = vld [vmem:[%s921_s25 + $0x10] ss:$8 sps:$4 sm:$0xff]   ;;  %v788_v18 = vld [vmem:[%s921_s25 + $0x24] ss:$8 sps:$4 sm:$0xff]   ;;  %v790_v19 = vld [vmem:[%s921_s25 + $0x20] ss:$8 sps:$4 sm:$0xff]  }
  0x13   : > { %560 = vmatpush1.bf16.msra.mxu1 %v784_v13  ;;  %v791_v20 = vld [vmem:[%s921_s25 + $0x34] ss:$8 sps:$4 sm:$0xff]   ;;  %v803_v21 = vld [vmem:[%s921_s25 + $0x104] ss:$8 sps:$4 sm:$0xff]   ;;  %v793_v22 = vld [vmem:[%s921_s25 + $0x30] ss:$8 sps:$4 sm:$0xff]  }
  0x14   : > { %561 = vmatprep.subr.bf16.mxu1 %v785_v14  ;;  %v794_v23 = vld [vmem:[%s921_s25 + $0x44] ss:$8 sps:$4 sm:$0xff]   ;;  %v807_v24 = vld [vmem:[%s921_s25 + $0x100] ss:$8 sps:$4 sm:$0xff]   ;;  %600 = vmatprep.subr.bf16.mxu0 %v803_v21  ;;  %v809_v25 = vld [vmem:[%s921_s25 + $0x114] ss:$8 sps:$4 sm:$0xff]  }
  0x15   : > { %601 = vmatpush1.bf16.msra.mxu0 %v807_v24  ;;  %v796_v26 = vld [vmem:[%s921_s25 + $0x40] ss:$8 sps:$4 sm:$0xff]   ;;  %v813_v27 = vld [vmem:[%s921_s25 + $0x110] ss:$8 sps:$4 sm:$0xff]   ;;  %v815_v28 = vld [vmem:[%s921_s25 + $0x124] ss:$8 sps:$4 sm:$0xff]  }
  0x16   : > { %602 = vmatprep.subr.bf16.mxu0 %v809_v25  ;;  %v797_v29 = vld [vmem:[%s921_s25 + $0x54] ss:$8 sps:$4 sm:$0xff]   ;;  %v819_v30 = vld [vmem:[%s921_s25 + $0x120] ss:$8 sps:$4 sm:$0xff]   ;;  %v799_v32 = vld [vmem:[%s921_s25 + $0x50] ss:$8 sps:$4 sm:$0xff]  }
  0x17   : > { %562 = vmatpush1.bf16.msra.mxu1 %v787_v17  ;;  %v821_v31 = vld [vmem:[%s921_s25 + $0x134] ss:$8 sps:$4 sm:$0xff]   ;;  %v800_v33 = vld [vmem:[%s921_s25 + $0x64] ss:$8 sps:$4 sm:$0xff]   ;;  %v825_v34 = vld [vmem:[%s921_s25 + $0x130] ss:$8 sps:$4 sm:$0xff]  }
  0x18   : > { %563 = vmatprep.subr.bf16.mxu1 %v788_v18  ;;  %v827_v35 = vld [vmem:[%s921_s25 + $0x144] ss:$8 sps:$4 sm:$0xff]   ;;  %v802_v36 = vld [vmem:[%s921_s25 + $0x60] ss:$8 sps:$4 sm:$0xff]   ;;  %v805_v37 = vld [vmem:[%s921_s25 + $0x74] ss:$8 sps:$4 sm:$0xff]  }
  0x19   : > { %603 = vmatpush1.bf16.msra.mxu0 %v813_v27  ;;  %v831_v38 = vld [vmem:[%s921_s25 + $0x140] ss:$8 sps:$4 sm:$0xff]   ;;  %v833_v39 = vld [vmem:[%s921_s25 + $0x154] ss:$8 sps:$4 sm:$0xff]   ;;  %v808_v40 = vld [vmem:[%s921_s25 + $0x70] ss:$8 sps:$4 sm:$0xff]  }
  0x1a   : > { %604 = vmatprep.subr.bf16.mxu0 %v815_v28  ;;  %v811_v41 = vld [vmem:[%s921_s25 + $0x84] ss:$8 sps:$4 sm:$0xff]   ;;  %v837_v42 = vld [vmem:[%s921_s25 + $0x150] ss:$8 sps:$4 sm:$0xff]   ;;  %v814_v44 = vld [vmem:[%s921_s25 + $0x80] ss:$8 sps:$4 sm:$0xff]  }
  0x1b   : > { %564 = vmatpush1.bf16.msra.mxu1 %v790_v19  ;;  %v839_v43 = vld [vmem:[%s921_s25 + $0x164] ss:$8 sps:$4 sm:$0xff]   ;;  %v817_v45 = vld [vmem:[%s921_s25 + $0x94] ss:$8 sps:$4 sm:$0xff]   ;;  %v843_v46 = vld [vmem:[%s921_s25 + $0x160] ss:$8 sps:$4 sm:$0xff]  }
  0x1c   : > { %565 = vmatprep.subr.bf16.mxu1 %v791_v20  ;;  %v845_v47 = vld [vmem:[%s921_s25 + $0x174] ss:$8 sps:$4 sm:$0xff]   ;;  %v820_v48 = vld [vmem:[%s921_s25 + $0x90] ss:$8 sps:$4 sm:$0xff]   ;;  %v275_v49 = vld [vmem:[%s921_s25 + $0x180] sm:$0xff] }
  0x1d   : > { %605 = vmatpush1.bf16.msra.mxu0 %v819_v30  ;;  %v823_v50 = vld [vmem:[%s921_s25 + $0xa4] ss:$8 sps:$4 sm:$0xff]   ;;  %v849_v51 = vld [vmem:[%s921_s25 + $0x170] ss:$8 sps:$4 sm:$0xff]   ;;  %v760_v52 = vcombine.high %v275_v49, %v275_v49  ;;  %v759_v53 = vcombine.low %v275_v49, %v275_v49  ;;  %v826_v54 = vld [vmem:[%s921_s25 + $0xa0] ss:$8 sps:$4 sm:$0xff]  }
  0x1e   : > { %606 = vmatprep.subr.bf16.mxu0 %v821_v31  ;;  %v829_v55 = vld [vmem:[%s921_s25 + $0xb4] ss:$8 sps:$4 sm:$0xff]   ;;  %v832_v57 = vld [vmem:[%s921_s25 + $0xb0] ss:$8 sps:$4 sm:$0xff]   ;;  %v835_v58 = vld [vmem:[%s921_s25 + $0xc4] ss:$8 sps:$4 sm:$0xff]  }
  0x1f   : > { %566 = vmatpush1.bf16.msra.mxu1 %v793_v22  ;;  %v554_v56 = vsel %vm552_vm1, %v759_v53, 0  ;;  %v838_v59 = vld [vmem:[%s921_s25 + $0xc0] ss:$8 sps:$4 sm:$0xff]   ;;  %v841_v60 = vld [vmem:[%s921_s25 + $0xd4] ss:$8 sps:$4 sm:$0xff]  }
  0x20   : > { %567 = vmatprep.subr.bf16.mxu1 %v794_v23  ;;  %v844_v61 = vld [vmem:[%s921_s25 + $0xd0] ss:$8 sps:$4 sm:$0xff]   ;;  %v847_v62 = vld [vmem:[%s921_s25 + $0xe4] ss:$8 sps:$4 sm:$0xff]   ;;  %v850_v63 = vld [vmem:[%s921_s25 + $0xe0] ss:$8 sps:$4 sm:$0xff]  }
  0x21   : > { %607 = vmatpush1.bf16.msra.mxu0 %v825_v34  ;;  %v852_v0 = vld [vmem:[%s921_s25 + $0xf4] ss:$8 sps:$4 sm:$0xff]   ;;  %v855_v1 = vld [vmem:[%s921_s25 + $0xf0] ss:$8 sps:$4 sm:$0xff]  }
  0x22   : > { %608 = vmatprep.subr.bf16.mxu0 %v827_v35 }
  0x23   : > { %568 = vmatpush1.bf16.msra.mxu1 %v796_v26 }
  0x24   : > { %569 = vmatprep.subr.bf16.mxu1 %v797_v29 }
  0x25   : > { %609 = vmatpush1.bf16.msra.mxu0 %v831_v38 }
  0x26   : > { %610 = vmatprep.subr.bf16.mxu0 %v833_v39 }
  0x27   : > { %570 = vmatpush1.bf16.msra.mxu1 %v799_v32 }
  0x28   : > { %571 = vmatprep.subr.bf16.mxu1 %v800_v33 }
  0x29   : > { %611 = vmatpush1.bf16.msra.mxu0 %v837_v42 }
  0x2a   : > { %612 = vmatprep.subr.bf16.mxu0 %v839_v43 }
  0x2b   : > { %572 = vmatpush1.bf16.msra.mxu1 %v802_v36 }
  0x2c   : > { %573 = vmatprep.subr.bf16.mxu1 %v805_v37 }
  0x2d   : > { %613 = vmatpush1.bf16.msra.mxu0 %v843_v46 }
  0x2e   : > { %614 = vmatprep.subr.bf16.mxu0 %v845_v47 }
  0x2f   : > { %574 = vmatpush1.bf16.msra.mxu1 %v808_v40 }
  0x30   : > { %575 = vmatprep.subr.bf16.mxu1 %v811_v41 }
  0x31   : > { %615 = vmatpush1.bf16.msra.mxu0 %v849_v51 }
  0x32   : > { %761 = vmatprep.subr.msk.bf16.mxu0 %vm552_vm1, %v760_v52 }
  0x33   : > { %576 = vmatpush1.bf16.msra.mxu1 %v814_v44 }
  0x34   : > { %577 = vmatprep.subr.bf16.mxu1 %v817_v45 }
  0x35   : > { %617 = vmatpush1.bf16.msra.mxu0 %v554_v56 }
  0x37   : > { %578 = vmatpush1.bf16.msra.mxu1 %v820_v48 }
  0x38   : > { %579 = vmatprep.subr.bf16.mxu1 %v823_v50  ;;  %633 = vmatmul.mubr.bf16.vlgmr.msra.gmra.mrb[0].mxu0 %v924_v11 }
  0x3b   : > { %580 = vmatpush1.bf16.msra.mxu1 %v826_v54 }
  0x3c   : > { %581 = vmatprep.subr.bf16.mxu1 %v829_v55 }
  0x3f   : > { %582 = vmatpush1.bf16.msra.mxu1 %v832_v57 }
  0x40   : > { %583 = vmatprep.subr.bf16.mxu1 %v835_v58 }
  0x43   : > { %584 = vmatpush1.bf16.msra.mxu1 %v838_v59 }
  0x44   : > { %585 = vmatprep.subr.bf16.mxu1 %v841_v60 }
  0x47   : > { %586 = vmatpush1.bf16.msra.mxu1 %v844_v61 }
  0x48   : > { %587 = vmatprep.subr.bf16.mxu1 %v847_v62 }
  0x4b   : > { %588 = vmatpush1.bf16.msra.mxu1 %v850_v63 }
  0x4c   : > { %589 = vmatprep.subr.bf16.mxu1 %v852_v0 }
  0x4f   : > { %590 = vmatpush1.bf16.msra.mxu1 %v855_v1 }
  0x52   : > { %592 = vmatmul.mubr.bf16.vlgmr.msra.gmra.mrb[0].mxu1 %v926_v12 }
  0x86   : > { %v280_v6 = vpop.permute.xlu0 %279 }
 0x10b   : > { %v634_v2 = vpop.f32.mrb[0].mxu0 }
 0x10c   : > { %v636_v3 = vpop.f32.mrb[1].mxu0 }
 0x10d   : > { %v638_v4 = vpop.f32.mrb[2].mxu0 }
 0x10e   : > { %v639_v5 = vpop.f32.mrb[3].mxu0 }
 0x125   : > { %v593_v7 = vpop.f32.mrb[0].mxu1 }
 0x126   : > { %v594_v8 = vadd.f32 %v593_v7, %v280_v6  ;;  %v595_v9 = vpop.f32.mrb[1].mxu1 }
 0x127   : > { %v596_v10 = vadd.f32 %v595_v9, %v280_v6  ;;  %v597_v11 = vpop.f32.mrb[2].mxu1 }
 0x128   : > { %v635_v13 = vadd.f32 %v634_v2, %v594_v8  ;;  %v598_v14 = vpop.f32.mrb[3].mxu1 }
 0x129   : > { %v637_v15 = vadd.f32 %v636_v3, %v596_v10 }
 0x12a   : > { %857 = vtanh.f32 %v635_v13 }
 0x12b   : > { %859 = vtanh.f32 %v637_v15 }
 0x134   : > { %v858_v16 = vpop.eup %857 }
 0x135   : > { %v860_v17 = vpop.eup %859 }
 0x136   : > { %v645_v12 = vcombine.low %v858_v16, %v860_v17 }
 0x138   : > { %647 = vst [vmem:[%s224_s29] sm:$0x77] %v645_v12 }
 0x139 PF: > { %s15_s18 = sadd.s32 1, %s867_s18  }
 0x13a   : > { %p12_p4 = scmp.ge.s32.totalorder %s15_s18, 4  }
 0x13c   :  { %14 = sbr.rel (!%p12_p4) target bundleno = 1 (0x1), region = 70 }

</bundles_post_ra>
